<compile_context>
chip_gen: v7x
topology: tpu7x:2x2x1
jax: 0.10.0
libtpu: 0.0.40
codegen_flags: <defaults>
</compile_context>

<pallas_src>
import jax
import jax.numpy as jnp
from jax.experimental import pallas as pl
from jax.experimental.pallas import tpu as pltpu

EPS = 1e-5  # PyTorch LayerNorm default eps


def _layernorm_f32(x, gamma, beta):
    # Single-pass LayerNorm: var = E[x^2] - mu^2 (one XLU sweep instead of two).
    n = x.shape[-1]
    inv_n = 1.0 / n
    s = jnp.sum(x, axis=-1, keepdims=True)
    ss = jnp.sum(x * x, axis=-1, keepdims=True)
    mu = s * inv_n
    var = jnp.maximum(ss * inv_n - mu * mu, 0.0)
    return (x - mu) * jax.lax.rsqrt(var + EPS) * gamma + beta


def decoder_kernel(z_ref,
                   w1_ref, b1_ref, g1_ref, bt1_ref,
                   w2_ref, b2_ref, g2_ref, bt2_ref,
                   w3_ref, b3_ref,
                   out_ref):
    # Hoist the tiny (1, N) f32 rows once; reuse below (no repeated ref reads /
    # broadcasts inside the epilogues).
    b1, g1, bt1 = b1_ref[...], g1_ref[...], bt1_ref[...]
    b2, g2, bt2 = b2_ref[...], g2_ref[...], bt2_ref[...]
    b3 = b3_ref[...]

    # fc1: bf16 @ bf16 -> f32 accumulate, then LayerNorm + ReLU in f32.
    z = z_ref[...]                                   # bf16, feeds MXU directly
    h = jnp.dot(z, w1_ref[...], preferred_element_type=jnp.float32) + b1
    h = jnp.maximum(_layernorm_f32(h, g1, bt1), 0.0)

    # TODO(synk): nn.Dropout(0.8) — identity in eval mode; stochastic
    # training-mode dropout (pltpu.prng_seed / prng_random_bits) not implemented.

    # fc2
    h = jnp.dot(h.astype(jnp.bfloat16), w2_ref[...],
                preferred_element_type=jnp.float32) + b2
    h = jnp.maximum(_layernorm_f32(h, g2, bt2), 0.0)

    # fc3 (output dim padded to a lane-dense multiple of 128 by the wrapper)
    out = jnp.dot(h.astype(jnp.bfloat16), w3_ref[...],
                  preferred_element_type=jnp.float32) + b3
    out_ref[...] = out.astype(out_ref.dtype)


def decoder_forward(z, params, *, batch_tile=None):
    B, latent_dim = z.shape
    out_dim = params["w3"].shape[1]
    out_pad = ((out_dim + 127) // 128) * 128         # lane-dense output width

    # Explicit MXU-aligned batch tile: 256 rows by default (multiple of the
    # 8/16 sublane tile and the 256-row MXU pass on v6e), capped at B for
    # small batches. Batch is zero-padded up to a tile multiple.
    if batch_tile is None:
        batch_tile = min(256, B)
    batch_tile = max(int(batch_tile), 1)
    B_pad = pl.cdiv(B, batch_tile) * batch_tile

    z_bf = z.astype(jnp.bfloat16)
    if B_pad != B:
        z_bf = jnp.pad(z_bf, ((0, B_pad - B), (0, 0)))

    w1 = params["w1"].astype(jnp.bfloat16)
    w2 = params["w2"].astype(jnp.bfloat16)
    w3 = params["w3"].astype(jnp.bfloat16)
    b3 = params["b3"]
    if out_pad != out_dim:
        w3 = jnp.pad(w3, ((0, 0), (0, out_pad - out_dim)))
        b3 = jnp.pad(b3, ((0, 0), (0, out_pad - out_dim)))

    def full_spec(m, n):
        return pl.BlockSpec((m, n), lambda i: (0, 0))

    in_specs = [
        pl.BlockSpec((batch_tile, latent_dim), lambda i: (i, 0)),   # z
        full_spec(latent_dim, 256), full_spec(1, 256),              # fc1 W, b
        full_spec(1, 256), full_spec(1, 256),                       # ln1 gamma, beta
        full_spec(256, 1024), full_spec(1, 1024),                   # fc2 W, b
        full_spec(1, 1024), full_spec(1, 1024),                     # ln2 gamma, beta
        full_spec(1024, out_pad), full_spec(1, out_pad),            # fc3 W, b
    ]
    out_specs = pl.BlockSpec((batch_tile, out_pad), lambda i: (i, 0))

    flops = 2 * B_pad * (latent_dim * 256 + 256 * 1024 + 1024 * out_pad)
    bytes_accessed = (
        B_pad * latent_dim * 2                       # z (bf16)
        + B_pad * out_pad * 4                        # out (f32)
        + (latent_dim * 256 + 256 * 1024 + 1024 * out_pad) * 2   # bf16 weights
        + (3 * 256 + 3 * 1024 + out_pad) * 4)        # f32 bias/gamma/beta rows

    out = pl.pallas_call(
        decoder_kernel,
        grid=(B_pad // batch_tile,),
        in_specs=in_specs,
        out_specs=out_specs,
        out_shape=jax.ShapeDtypeStruct((B_pad, out_pad), jnp.float32),
        compiler_params=pltpu.CompilerParams(
            dimension_semantics=("parallel",),
            vmem_limit_bytes=32 * 1024 * 1024,
        ),
        cost_estimate=pl.CostEstimate(
            flops=flops, transcendentals=0, bytes_accessed=bytes_accessed),
    )(z_bf,
      w1, params["b1"], params["g1"], params["bt1"],
      w2, params["b2"], params["g2"], params["bt2"],
      w3, b3)

    return out[:B, :out_dim]


def init_params(key, latent_dim, output_dim):
    ks = jax.random.split(key, 6)

    def linear(kw, kb, fan_in, fan_out):
        bound = 1.0 / jnp.sqrt(fan_in)
        # Weights stored bf16 (MXU operands); biases / LN params stay f32.
        w = jax.random.uniform(kw, (fan_in, fan_out), jnp.float32, -bound, bound)
        b = jax.random.uniform(kb, (1, fan_out), jnp.float32, -bound, bound)
        return w.astype(jnp.bfloat16), b

    w1, b1 = linear(ks[0], ks[1], latent_dim, 256)
    w2, b2 = linear(ks[2], ks[3], 256, 1024)
    w3, b3 = linear(ks[4], ks[5], 1024, output_dim)
    return {
        "w1": w1, "b1": b1,
        "g1": jnp.ones((1, 256), jnp.float32), "bt1": jnp.zeros((1, 256), jnp.float32),
        "w2": w2, "b2": b2,
        "g2": jnp.ones((1, 1024), jnp.float32), "bt2": jnp.zeros((1, 1024), jnp.float32),
        "w3": w3, "b3": b3,
    }


def decoder_reference(z, p):
    # Pure-JAX reference with the same numerics convention as the kernel:
    # bf16 matmul operands, f32 accumulation, f32 LayerNorm/ReLU.
    def mm(a, w):
        return jnp.dot(a.astype(jnp.bfloat16), w.astype(jnp.bfloat16),
                       preferred_element_type=jnp.float32)

    h = mm(z, p["w1"]) + p["b1"]
    h = jnp.maximum(_layernorm_f32(h, p["g1"], p["bt1"]), 0.0)
    h = mm(h, p["w2"]) + p["b2"]
    h = jnp.maximum(_layernorm_f32(h, p["g2"], p["bt2"]), 0.0)
    return mm(h, p["w3"]) + p["b3"]


if __name__ == "__main__":
    latent_dim, output_dim, batch = 32, 64, 8

    key = jax.random.PRNGKey(0)
    k_z, k_p = jax.random.split(key)
    z = jax.random.normal(k_z, (batch, latent_dim), jnp.float32)
    params = init_params(k_p, latent_dim, output_dim)

    out = decoder_forward(z, params)
    out = jax.block_until_ready(out)

    ref = decoder_reference(z, params)
    assert out.shape == (batch, output_dim)
    assert jnp.allclose(out, ref, atol=2e-3, rtol=2e-3), \
        float(jnp.max(jnp.abs(out - ref)))

    print("KERNEL_OK")
</pallas_src>

<mosaic_0001>
module attributes {stable_mosaic.version = 11 : i64} {
  func.func @decoder_kernel(%arg0: i32, %arg1: memref<8x32xbf16, #tpu.memory_space<vmem>>, %arg2: memref<32x256xbf16, #tpu.memory_space<vmem>>, %arg3: memref<1x256xf32, #tpu.memory_space<vmem>>, %arg4: memref<1x256xf32, #tpu.memory_space<vmem>>, %arg5: memref<1x256xf32, #tpu.memory_space<vmem>>, %arg6: memref<256x1024xbf16, #tpu.memory_space<vmem>>, %arg7: memref<1x1024xf32, #tpu.memory_space<vmem>>, %arg8: memref<1x1024xf32, #tpu.memory_space<vmem>>, %arg9: memref<1x1024xf32, #tpu.memory_space<vmem>>, %arg10: memref<1024x128xbf16, #tpu.memory_space<vmem>>, %arg11: memref<1x128xf32, #tpu.memory_space<vmem>>, %arg12: memref<8x128xf32, #tpu.memory_space<vmem>>) attributes {dimension_semantics = [#tpu.dimension_semantics<parallel>], iteration_bounds = array<i64: 1>, scalar_prefetch = 0 : i64, scratch_operands = 0 : i64, tpu.core_type = #tpu.core_type<tc>, window_params = [{transform_indices = @transform_0, window_bounds = array<i64: 8, 32>}, {pipeline_mode = #tpu.pipeline_mode<synchronous>, transform_indices = @transform_1, window_bounds = array<i64: 32, 256>}, {pipeline_mode = #tpu.pipeline_mode<synchronous>, transform_indices = @transform_2, window_bounds = array<i64: 1, 256>}, {pipeline_mode = #tpu.pipeline_mode<synchronous>, transform_indices = @transform_3, window_bounds = array<i64: 1, 256>}, {pipeline_mode = #tpu.pipeline_mode<synchronous>, transform_indices = @transform_4, window_bounds = array<i64: 1, 256>}, {pipeline_mode = #tpu.pipeline_mode<synchronous>, transform_indices = @transform_5, window_bounds = array<i64: 256, 1024>}, {pipeline_mode = #tpu.pipeline_mode<synchronous>, transform_indices = @transform_6, window_bounds = array<i64: 1, 1024>}, {pipeline_mode = #tpu.pipeline_mode<synchronous>, transform_indices = @transform_7, window_bounds = array<i64: 1, 1024>}, {pipeline_mode = #tpu.pipeline_mode<synchronous>, transform_indices = @transform_8, window_bounds = array<i64: 1, 1024>}, {pipeline_mode = #tpu.pipeline_mode<synchronous>, transform_indices = @transform_9, window_bounds = array<i64: 1024, 128>}, {pipeline_mode = #tpu.pipeline_mode<synchronous>, transform_indices = @transform_10, window_bounds = array<i64: 1, 128>}, {transform_indices = @transform_11, window_bounds = array<i64: 8, 128>}]} {
    %c0 = arith.constant 0 : index
    %c0_0 = arith.constant 0 : index
    %0 = vector.load %arg3[%c0, %c0_0] : memref<1x256xf32, #tpu.memory_space<vmem>>, vector<1x256xf32>
    %c0_1 = arith.constant 0 : index
    %c0_2 = arith.constant 0 : index
    %1 = vector.load %arg4[%c0_1, %c0_2] : memref<1x256xf32, #tpu.memory_space<vmem>>, vector<1x256xf32>
    %c0_3 = arith.constant 0 : index
    %c0_4 = arith.constant 0 : index
    %2 = vector.load %arg5[%c0_3, %c0_4] : memref<1x256xf32, #tpu.memory_space<vmem>>, vector<1x256xf32>
    %c0_5 = arith.constant 0 : index
    %c0_6 = arith.constant 0 : index
    %3 = vector.load %arg7[%c0_5, %c0_6] : memref<1x1024xf32, #tpu.memory_space<vmem>>, vector<1x1024xf32>
    %c0_7 = arith.constant 0 : index
    %c0_8 = arith.constant 0 : index
    %4 = vector.load %arg8[%c0_7, %c0_8] : memref<1x1024xf32, #tpu.memory_space<vmem>>, vector<1x1024xf32>
    %c0_9 = arith.constant 0 : index
    %c0_10 = arith.constant 0 : index
    %5 = vector.load %arg9[%c0_9, %c0_10] : memref<1x1024xf32, #tpu.memory_space<vmem>>, vector<1x1024xf32>
    %c0_11 = arith.constant 0 : index
    %c0_12 = arith.constant 0 : index
    %6 = vector.load %arg11[%c0_11, %c0_12] : memref<1x128xf32, #tpu.memory_space<vmem>>, vector<1x128xf32>
    %c0_13 = arith.constant 0 : index
    %c0_14 = arith.constant 0 : index
    %7 = vector.load %arg1[%c0_13, %c0_14] : memref<8x32xbf16, #tpu.memory_space<vmem>>, vector<8x32xbf16>
    %c0_15 = arith.constant 0 : index
    %c0_16 = arith.constant 0 : index
    %8 = vector.load %arg2[%c0_15, %c0_16] : memref<32x256xbf16, #tpu.memory_space<vmem>>, vector<32x256xbf16>
    %cst = arith.constant dense<0.000000e+00> : vector<8x256xf32>
    %9 = tpu.matmul %7, %8, %cst {dimension_numbers = #tpu.dot_dimension_numbers<[1], [0], [0], [1], [0, 0, 1, 1], [], []>} : vector<8x32xbf16>, vector<32x256xbf16>, vector<8x256xf32> -> vector<8x256xf32>
    %10 = vector.broadcast %0 : vector<1x256xf32> to vector<8x256xf32>
    %11 = arith.addf %9, %10 : vector<8x256xf32>
    %cst_17 = arith.constant dense<0.000000e+00> : vector<8xf32>
    %12 = vector.multi_reduction <add>, %11, %cst_17 [1] : vector<8x256xf32> to vector<8xf32>
    %13 = vector.shape_cast %12 : vector<8xf32> to vector<8x1xf32>
    %14 = arith.mulf %11, %11 : vector<8x256xf32>
    %cst_18 = arith.constant dense<0.000000e+00> : vector<8xf32>
    %15 = vector.multi_reduction <add>, %14, %cst_18 [1] : vector<8x256xf32> to vector<8xf32>
    %16 = vector.shape_cast %15 : vector<8xf32> to vector<8x1xf32>
    %cst_19 = arith.constant 3.906250e-03 : f32
    %17 = vector.broadcast %cst_19 : f32 to vector<8x1xf32>
    %18 = arith.mulf %13, %17 : vector<8x1xf32>
    %cst_20 = arith.constant 3.906250e-03 : f32
    %19 = vector.broadcast %cst_20 : f32 to vector<8x1xf32>
    %20 = arith.mulf %16, %19 : vector<8x1xf32>
    %21 = arith.mulf %18, %18 : vector<8x1xf32>
    %22 = arith.subf %20, %21 : vector<8x1xf32>
    %cst_21 = arith.constant 0.000000e+00 : f32
    %23 = vector.broadcast %cst_21 : f32 to vector<8x1xf32>
    %24 = arith.maximumf %22, %23 : vector<8x1xf32>
    %25 = vector.broadcast %18 : vector<8x1xf32> to vector<8x256xf32>
    %26 = arith.subf %11, %25 : vector<8x256xf32>
    %cst_22 = arith.constant 9.99999974E-6 : f32
    %27 = vector.broadcast %cst_22 : f32 to vector<8x1xf32>
    %28 = arith.addf %24, %27 : vector<8x1xf32>
    %29 = math.rsqrt %28 : vector<8x1xf32>
    %30 = vector.broadcast %29 : vector<8x1xf32> to vector<8x256xf32>
    %31 = arith.mulf %26, %30 : vector<8x256xf32>
    %32 = vector.broadcast %1 : vector<1x256xf32> to vector<8x256xf32>
    %33 = arith.mulf %31, %32 : vector<8x256xf32>
    %34 = vector.broadcast %2 : vector<1x256xf32> to vector<8x256xf32>
    %35 = arith.addf %33, %34 : vector<8x256xf32>
    %cst_23 = arith.constant 0.000000e+00 : f32
    %36 = vector.broadcast %cst_23 : f32 to vector<8x256xf32>
    %37 = arith.maximumf %35, %36 : vector<8x256xf32>
    %38 = arith.truncf %37 : vector<8x256xf32> to vector<8x256xbf16>
    %c0_24 = arith.constant 0 : index
    %c0_25 = arith.constant 0 : index
    %39 = vector.load %arg6[%c0_24, %c0_25] : memref<256x1024xbf16, #tpu.memory_space<vmem>>, vector<256x1024xbf16>
    %cst_26 = arith.constant dense<0.000000e+00> : vector<8x1024xf32>
    %40 = tpu.matmul %38, %39, %cst_26 {dimension_numbers = #tpu.dot_dimension_numbers<[1], [0], [0], [1], [0, 0, 1, 1], [], []>} : vector<8x256xbf16>, vector<256x1024xbf16>, vector<8x1024xf32> -> vector<8x1024xf32>
    %41 = vector.broadcast %3 : vector<1x1024xf32> to vector<8x1024xf32>
    %42 = arith.addf %40, %41 : vector<8x1024xf32>
    %cst_27 = arith.constant dense<0.000000e+00> : vector<8xf32>
    %43 = vector.multi_reduction <add>, %42, %cst_27 [1] : vector<8x1024xf32> to vector<8xf32>
    %44 = vector.shape_cast %43 : vector<8xf32> to vector<8x1xf32>
    %45 = arith.mulf %42, %42 : vector<8x1024xf32>
    %cst_28 = arith.constant dense<0.000000e+00> : vector<8xf32>
    %46 = vector.multi_reduction <add>, %45, %cst_28 [1] : vector<8x1024xf32> to vector<8xf32>
    %47 = vector.shape_cast %46 : vector<8xf32> to vector<8x1xf32>
    %cst_29 = arith.constant 9.765625E-4 : f32
    %48 = vector.broadcast %cst_29 : f32 to vector<8x1xf32>
    %49 = arith.mulf %44, %48 : vector<8x1xf32>
    %cst_30 = arith.constant 9.765625E-4 : f32
    %50 = vector.broadcast %cst_30 : f32 to vector<8x1xf32>
    %51 = arith.mulf %47, %50 : vector<8x1xf32>
    %52 = arith.mulf %49, %49 : vector<8x1xf32>
    %53 = arith.subf %51, %52 : vector<8x1xf32>
    %cst_31 = arith.constant 0.000000e+00 : f32
    %54 = vector.broadcast %cst_31 : f32 to vector<8x1xf32>
    %55 = arith.maximumf %53, %54 : vector<8x1xf32>
    %56 = vector.broadcast %49 : vector<8x1xf32> to vector<8x1024xf32>
    %57 = arith.subf %42, %56 : vector<8x1024xf32>
    %cst_32 = arith.constant 9.99999974E-6 : f32
    %58 = vector.broadcast %cst_32 : f32 to vector<8x1xf32>
    %59 = arith.addf %55, %58 : vector<8x1xf32>
    %60 = math.rsqrt %59 : vector<8x1xf32>
    %61 = vector.broadcast %60 : vector<8x1xf32> to vector<8x1024xf32>
    %62 = arith.mulf %57, %61 : vector<8x1024xf32>
    %63 = vector.broadcast %4 : vector<1x1024xf32> to vector<8x1024xf32>
    %64 = arith.mulf %62, %63 : vector<8x1024xf32>
    %65 = vector.broadcast %5 : vector<1x1024xf32> to vector<8x1024xf32>
    %66 = arith.addf %64, %65 : vector<8x1024xf32>
    %cst_33 = arith.constant 0.000000e+00 : f32
    %67 = vector.broadcast %cst_33 : f32 to vector<8x1024xf32>
    %68 = arith.maximumf %66, %67 : vector<8x1024xf32>
    %69 = arith.truncf %68 : vector<8x1024xf32> to vector<8x1024xbf16>
    %c0_34 = arith.constant 0 : index
    %c0_35 = arith.constant 0 : index
    %70 = vector.load %arg10[%c0_34, %c0_35] : memref<1024x128xbf16, #tpu.memory_space<vmem>>, vector<1024x128xbf16>
    %cst_36 = arith.constant dense<0.000000e+00> : vector<8x128xf32>
    %71 = tpu.matmul %69, %70, %cst_36 {dimension_numbers = #tpu.dot_dimension_numbers<[1], [0], [0], [1], [0, 0, 1, 1], [], []>} : vector<8x1024xbf16>, vector<1024x128xbf16>, vector<8x128xf32> -> vector<8x128xf32>
    %72 = vector.broadcast %6 : vector<1x128xf32> to vector<8x128xf32>
    %73 = arith.addf %71, %72 : vector<8x128xf32>
    %c0_37 = arith.constant 0 : index
    %c0_38 = arith.constant 0 : index
    %74 = vector.load %arg12[%c0_37, %c0_38] : memref<8x128xf32, #tpu.memory_space<vmem>>, vector<8x128xf32>
    tpu.vector_store %arg12[%c0_37, %c0_38], %73 {strides = array<i32>} : memref<8x128xf32, #tpu.memory_space<vmem>>, vector<8x128xf32>,
    return
  }
  func.func @transform_0(%arg0: i32) -> (i32, i32) {
    %c0_i32 = arith.constant 0 : i32
    %c0_i32_0 = arith.constant 0 : i32
    return %arg0, %c0_i32 : i32, i32
  }
  func.func @transform_1(%arg0: i32) -> (i32, i32) {
    %c0_i32 = arith.constant 0 : i32
    %c0_i32_0 = arith.constant 0 : i32
    %c0_i32_1 = arith.constant 0 : i32
    return %c0_i32, %c0_i32_0 : i32, i32
  }
  func.func @transform_2(%arg0: i32) -> (i32, i32) {
    %c0_i32 = arith.constant 0 : i32
    %c0_i32_0 = arith.constant 0 : i32
    %c0_i32_1 = arith.constant 0 : i32
    return %c0_i32, %c0_i32_0 : i32, i32
  }
  func.func @transform_3(%arg0: i32) -> (i32, i32) {
    %c0_i32 = arith.constant 0 : i32
    %c0_i32_0 = arith.constant 0 : i32
    %c0_i32_1 = arith.constant 0 : i32
    return %c0_i32, %c0_i32_0 : i32, i32
  }
  func.func @transform_4(%arg0: i32) -> (i32, i32) {
    %c0_i32 = arith.constant 0 : i32
    %c0_i32_0 = arith.constant 0 : i32
    %c0_i32_1 = arith.constant 0 : i32
    return %c0_i32, %c0_i32_0 : i32, i32
  }
  func.func @transform_5(%arg0: i32) -> (i32, i32) {
    %c0_i32 = arith.constant 0 : i32
    %c0_i32_0 = arith.constant 0 : i32
    %c0_i32_1 = arith.constant 0 : i32
    return %c0_i32, %c0_i32_0 : i32, i32
  }
  func.func @transform_6(%arg0: i32) -> (i32, i32) {
    %c0_i32 = arith.constant 0 : i32
    %c0_i32_0 = arith.constant 0 : i32
    %c0_i32_1 = arith.constant 0 : i32
    return %c0_i32, %c0_i32_0 : i32, i32
  }
  func.func @transform_7(%arg0: i32) -> (i32, i32) {
    %c0_i32 = arith.constant 0 : i32
    %c0_i32_0 = arith.constant 0 : i32
    %c0_i32_1 = arith.constant 0 : i32
    return %c0_i32, %c0_i32_0 : i32, i32
  }
  func.func @transform_8(%arg0: i32) -> (i32, i32) {
    %c0_i32 = arith.constant 0 : i32
    %c0_i32_0 = arith.constant 0 : i32
    %c0_i32_1 = arith.constant 0 : i32
    return %c0_i32, %c0_i32_0 : i32, i32
  }
  func.func @transform_9(%arg0: i32) -> (i32, i32) {
    %c0_i32 = arith.constant 0 : i32
    %c0_i32_0 = arith.constant 0 : i32
    %c0_i32_1 = arith.constant 0 : i32
    return %c0_i32, %c0_i32_0 : i32, i32
  }
  func.func @transform_10(%arg0: i32) -> (i32, i32) {
    %c0_i32 = arith.constant 0 : i32
    %c0_i32_0 = arith.constant 0 : i32
    %c0_i32_1 = arith.constant 0 : i32
    return %c0_i32, %c0_i32_0 : i32, i32
  }
  func.func @transform_11(%arg0: i32) -> (i32, i32) {
    %c0_i32 = arith.constant 0 : i32
    %c0_i32_0 = arith.constant 0 : i32
    return %arg0, %c0_i32 : i32, i32
  }
}

</mosaic_0001>

<bundles_post_ra>
// kernel: tpu_custom_call.1
= control target key start
LH: loop header
LB: loop body
LE: loop exit
PB: predicated region body
PF: predicated region fallthrough
CT: control target
= control target key end

     0   :  { %16 = vsyncpa [#allocation3], 0  ;;  %s2961_s0 = inlined_call_operand.hbm [shape: bf16[8,32], index: 0, kind: input, shape index: {}]   ;;  %s2962_s1 = inlined_call_operand.hbm [shape: bf16[32,256], index: 1, kind: input, shape index: {}]   ;;  %s2963_s2 = inlined_call_operand.vmem [shape: f32[1,256], index: 2, kind: input, shape index: {}]   ;;  %s2964_s3 = inlined_call_operand.hbm [shape: f32[1,256], index: 3, kind: input, shape index: {}]   ;;  %s2965_s4 = inlined_call_operand.hbm [shape: f32[1,256], index: 4, kind: input, shape index: {}]   ;;  %s2966_s5 = inlined_call_operand.hbm [shape: bf16[256,1024], index: 5, kind: input, shape index: {}]   ;;  %s2967_s6 = inlined_call_operand.vmem [shape: f32[1,1024], index: 6, kind: input, shape index: {}]   ;;  %s2968_s7 = inlined_call_operand.vmem [shape: f32[1,1024], index: 7, kind: input, shape index: {}]   ;;  %s2969_s8 = inlined_call_operand.vmem [shape: f32[1,1024], index: 8, kind: input, shape index: {}]   ;;  %s2970_s9 = inlined_call_operand.hbm [shape: bf16[1024,128], index: 9, kind: input, shape index: {}]   ;;  %s2971_s10 = inlined_call_operand.vmem [shape: f32[1,128], index: 10, kind: input, shape index: {}]   ;;  %s2972_s11 = inlined_call_operand.hbm [shape: f32[8,128], index: 11, kind: output, shape index: {}]  }
   0x1   :  { %17 = vsyncpa [#allocation6], 0 }
   0x2   :  { %18 = vsyncpa [#allocation9], 0 }
   0x3   :  { %19 = vsyncpa [#allocation12], 0 }
   0x4   :  { %20 = vsyncpa [#allocation4], 0  ;;  %s2624_s17 = smov [#allocation5]   ;;  %s2460_s21 = scalar_lea.hbm %s2962_s1, 512 }
   0x5   :  { %s36_s18 = sshll.u32 %s2624_s17, 4  ;;  %p2461_p0 = scmp.ne.s32.totalorder %s2962_s1, %s2460_s21  ;;  %s37_s18 = int_to_ptr.vmem [resolvable:$true] %s36_s18 }
   0x6   :  { %p2464_p1 = scmp.lt.u32.totalorder %s2460_s21, %s2962_s1 }
   0x8   :  { %p2466_p2 = pnand %p2464_p1, %p2461_p0 }
   0xa   :  { %2469 = shalt.err (!%p2466_p2)
}
   0xb   :  { %s2470_s26 = scalar_lea.vmem %s37_s18, 512  ;;  %p2475_p4 = scmp.lt.s32.totalorder %s37_s18, %s37_s18 }
   0xc   :  { %p2471_p3 = scmp.ne.s32.totalorder %s37_s18, %s2470_s26  ;;  %p2476_p5 = scmp.lt.s32.totalorder %s2470_s26, %s2470_s26 }
   0xe   :  { %p2477_p6 = por %p2476_p5, %p2475_p4 }
  0x10   :  { %p2478_p7 = pnand %p2477_p6, %p2471_p3 }
  0x12   :  { %2481 = shalt.err (!%p2478_p7)
}
  0x13   :  { %s2625_s27 = smov 128   ;;  %s2626_s28 = smov 8  }
  0x14   :  { %42 = dma.hbm_to_vmem [thread:$0]  %s2962_s1, 512, %s37_s18, [#allocation6], %s2625_s27, %s2625_s27, %s2626_s28  }
  0x15   :  { %s2627_s12 = smov [#allocation8]   ;;  %s2628_s14 = smov [#allocation2]  }
  0x16   :  { %s61_s13 = sshll.u32 %s2627_s12, 4  ;;  %s27_s15 = sshll.u32 %s2628_s14, 4  ;;  %s62_s13 = int_to_ptr.vmem [resolvable:$true] %s61_s13  ;;  %s28_s15 = int_to_ptr.vmem [resolvable:$true] %s27_s15 }
  0x17   :  { %s2482_s19 = scalar_lea.hbm %s2965_s4, 32 }
  0x18   :  { %p2483_p8 = scmp.ne.s32.totalorder %s2965_s4, %s2482_s19  ;;  %p2486_p9 = scmp.lt.u32.totalorder %s2482_s19, %s2965_s4 }
  0x1a   :  { %p2488_p10 = pnand %p2486_p9, %p2483_p8 }
  0x1c   :  { %2491 = shalt.err (!%p2488_p10)
}
  0x1d   :  { %s2492_s1 = scalar_lea.vmem %s62_s13, 32  ;;  %p2497_p12 = scmp.lt.s32.totalorder %s62_s13, %s62_s13 }
  0x1e   :  { %p2493_p11 = scmp.ne.s32.totalorder %s62_s13, %s2492_s1  ;;  %p2498_p13 = scmp.lt.s32.totalorder %s2492_s1, %s2492_s1 }
  0x20   :  { %p2499_p0 = por %p2498_p13, %p2497_p12 }
  0x22   :  { %p2500_p1 = pnand %p2499_p0, %p2493_p11 }
  0x24   :  { %2503 = shalt.err (!%p2500_p1)
}
  0x25   :  { %64 = dma.hbm_to_vmem [thread:$0]  %s2965_s4, 32, %s62_s13, [#allocation9]  }
  0x26   :  { %s2504_s27 = scalar_lea.hbm %s2961_s0, 64 }
  0x27   :  { %p2505_p2 = scmp.ne.s32.totalorder %s2961_s0, %s2504_s27  ;;  %p2508_p3 = scmp.lt.u32.totalorder %s2504_s27, %s2961_s0 }
  0x29   :  { %p2510_p4 = pnand %p2508_p3, %p2505_p2 }
  0x2b   :  { %2513 = shalt.err (!%p2510_p4)
}
  0x2c   :  { %s2514_s14 = scalar_lea.vmem %s28_s15, 64  ;;  %p2519_p6 = scmp.lt.s32.totalorder %s28_s15, %s28_s15 }
  0x2d   :  { %p2515_p5 = scmp.ne.s32.totalorder %s28_s15, %s2514_s14  ;;  %p2520_p7 = scmp.lt.s32.totalorder %s2514_s14, %s2514_s14 }
  0x2f   :  { %p2521_p8 = por %p2520_p7, %p2519_p6 }
  0x31   :  { %p2522_p9 = pnand %p2521_p8, %p2515_p5 }
  0x33   :  { %2525 = shalt.err (!%p2522_p9)
}
  0x34   :  { %30 = dma.hbm_to_vmem [thread:$0]  %s2961_s0, 64, %s28_s15, [#allocation3]  }
  0x35   :  { %s2629_s16 = smov [#allocation7]   ;;  %s2630_s19 = smov [#allocation10]  }
  0x36   :  { %s51_s17 = sshll.u32 %s2629_s16, 4  ;;  %s70_s20 = sshll.u32 %s2630_s19, 4  ;;  %s52_s17 = int_to_ptr.vmem [resolvable:$true] %s51_s17  ;;  %s71_s20 = int_to_ptr.vmem [resolvable:$true] %s70_s20 }
  0x37   :  { %s2526_s23 = scalar_lea.hbm %s2964_s3, 32 }
  0x38   :  { %p2527_p10 = scmp.ne.s32.totalorder %s2964_s3, %s2526_s23  ;;  %p2530_p11 = scmp.lt.u32.totalorder %s2526_s23, %s2964_s3 }
  0x3a   :  { %p2532_p12 = pnand %p2530_p11, %p2527_p10 }
  0x3c   :  { %2535 = shalt.err (!%p2532_p12)
}
  0x3d   :  { %s2536_s0 = scalar_lea.vmem %s52_s17, 32  ;;  %p2541_p0 = scmp.lt.s32.totalorder %s52_s17, %s52_s17 }
  0x3e   :  { %p2537_p13 = scmp.ne.s32.totalorder %s52_s17, %s2536_s0  ;;  %p2542_p1 = scmp.lt.s32.totalorder %s2536_s0, %s2536_s0 }
  0x40   :  { %p2543_p2 = por %p2542_p1, %p2541_p0 }
  0x42   :  { %p2544_p3 = pnand %p2543_p2, %p2537_p13 }
  0x44   :  { %2547 = shalt.err (!%p2544_p3)
}
  0x45   :  { %54 = dma.hbm_to_vmem [thread:$0]  %s2964_s3, 32, %s52_s17, [#allocation6]  }
  0x46   :  { %s2548_s29 = scalar_lea.hbm %s2966_s5, 16384 }
  0x47   :  { %p2549_p4 = scmp.ne.s32.totalorder %s2966_s5, %s2548_s29  ;;  %p2552_p5 = scmp.lt.u32.totalorder %s2548_s29, %s2966_s5 }
  0x49   :  { %p2554_p6 = pnand %p2552_p5, %p2549_p4 }
  0x4b   :  { %2557 = shalt.err (!%p2554_p6)
}
  0x4c   :  { %s2558_s13 = scalar_lea.vmem %s71_s20, 16384  ;;  %p2563_p8 = scmp.lt.s32.totalorder %s71_s20, %s71_s20 }
  0x4d   :  { %p2559_p7 = scmp.ne.s32.totalorder %s71_s20, %s2558_s13  ;;  %p2564_p9 = scmp.lt.s32.totalorder %s2558_s13, %s2558_s13 }
  0x4f   :  { %p2565_p10 = por %p2564_p9, %p2563_p8 }
  0x51   :  { %p2566_p11 = pnand %p2565_p10, %p2559_p7 }
  0x53   :  { %2569 = shalt.err (!%p2566_p11)
}
  0x54   :  { %s2631_s3 = smov 512   ;;  %s2632_s16 = smov 32  }
  0x55   :  { %76 = dma.hbm_to_vmem [thread:$0]  %s2966_s5, 16384, %s71_s20, [#allocation9], %s2631_s3, %s2631_s3, %s2632_s16  }
  0x56   :  { %s2633_s21 = smov [#allocation11]   ;;  %s2570_s18 = scalar_lea.hbm %s2970_s9, 8192 }
  0x57   :  { %s88_s22 = sshll.u32 %s2633_s21, 4  ;;  %p2571_p12 = scmp.ne.s32.totalorder %s2970_s9, %s2570_s18  ;;  %s89_s22 = int_to_ptr.vmem [resolvable:$true] %s88_s22 }
  0x58   :  { %p2574_p13 = scmp.lt.u32.totalorder %s2570_s18, %s2970_s9 }
  0x5a   :  { %p2576_p0 = pnand %p2574_p13, %p2571_p12 }
  0x5c   :  { %2579 = shalt.err (!%p2576_p0)
}
  0x5d   :  { %s2580_s26 = scalar_lea.vmem %s89_s22, 8192  ;;  %p2585_p2 = scmp.lt.s32.totalorder %s89_s22, %s89_s22 }
  0x5e   :  { %p2581_p1 = scmp.ne.s32.totalorder %s89_s22, %s2580_s26  ;;  %p2586_p3 = scmp.lt.s32.totalorder %s2580_s26, %s2580_s26 }
  0x60   :  { %p2587_p4 = por %p2586_p3, %p2585_p2 }
  0x62   :  { %p2588_p5 = pnand %p2587_p4, %p2581_p1 }
  0x64   :  { %2591 = shalt.err (!%p2588_p5)
}
  0x65   :  { %s2634_s5 = smov 64   ;;  %s2635_s20 = smov 4  }
  0x66   :  { %94 = dma.hbm_to_vmem [thread:$0]  %s2970_s9, 8192, %s89_s22, [#allocation12], %s2634_s5, %s2634_s5, %s2635_s20  }
  0x67   :  { %2614 = dma.done.wait [#allocation3], 64  }
  0x68   :  { %2615 = vsyncadd [#allocation3], 4294967232 }
  0x69   :  { %2616 = dma.done.wait [#allocation6], 544  }
  0x6a   :  { %2617 = vsyncadd [#allocation6], 4294966752 }
  0x6b   :  { %2618 = dma.done.wait [#allocation9], 16416  }
  0x6c   :  { %2619 = vsyncadd [#allocation9], 4294950880 }
  0x6d   :  { %2620 = dma.done.wait [#allocation12], 8192  }
  0x6e   :  { %2621 = vsyncadd [#allocation12], 4294959104  ;;  %v2636_v0 = vmov 0   ;;  %v2386_v1 = vld [vmem:[#allocation5 + $0x4] ss:$8 sps:$4 sm:$0xff]   ;;  %vm159_vm0 = vcmask 261120  }
  0x6f   :  { %195 = vmatprep.mubr.bf16.mxu0 %v2636_v0  ;;  %v2388_v2 = vld [vmem:[#allocation5] ss:$8 sps:$4 sm:$0xff]   ;;  %163 = vmatprep.subr.bf16.mxu0 %v2386_v1  ;;  %v2389_v3 = vld [vmem:[#allocation5 + $0x14] ss:$8 sps:$4 sm:$0xff]   ;;  %v2391_v4 = vld [vmem:[#allocation5 + $0x10] ss:$8 sps:$4 sm:$0xff]  }
  0x70   :  { %164 = vmatpush1.bf16.msra.mxu0 %v2388_v2  ;;  %v123_v5 = vld [vmem:[#allocation2] sm:$0xf]  ;;  %v253_v6 = vld [vmem:[#allocation10] sm:$0xff]  ;;  %v254_v8 = vld [vmem:[#allocation10 + $0x8] sm:$0xff] }
  0x71   :  { %165 = vmatprep.subr.bf16.mxu0 %v2389_v3  ;;  %v257_v7 = vld [vmem:[#allocation10 + $0x20] sm:$0xff]  ;;  %v258_v10 = vld [vmem:[#allocation10 + $0x28] sm:$0xff] }
  0x72   :  { %v2092_v9 = vcombine.high %v253_v6, %v257_v7  ;;  %v2091_v11 = vcombine.low %v253_v6, %v257_v7  ;;  %v261_v12 = vld [vmem:[#allocation10 + $0x40] sm:$0xff]  ;;  %v2093_v14 = vcombine.low %v254_v8, %v258_v10  ;;  %v2094_v15 = vcombine.high %v254_v8, %v258_v10  ;;  %v262_v17 = vld [vmem:[#allocation10 + $0x48] sm:$0xff] }
  0x73   :  { %v265_v13 = vld [vmem:[#allocation10 + $0x60] sm:$0xff]  ;;  %v266_v18 = vld [vmem:[#allocation10 + $0x68] sm:$0xff]  ;;  %v129_v6 = vlaneseq }
  0x74   :  { %166 = vmatpush1.bf16.msra.mxu0 %v2391_v4  ;;  %v2100_v16 = vcombine.high %v261_v12, %v265_v13  ;;  %v269_v19 = vld [vmem:[#allocation10 + $0x80] sm:$0xff]  ;;  %1062 = vmatprep.subr.bf16.mxu1 %v2092_v9  ;;  %v2102_v20 = vcombine.high %v262_v17, %v266_v18  ;;  %v270_v22 = vld [vmem:[#allocation10 + $0x88] sm:$0xff]  ;;  %v2099_v24 = vcombine.low %v261_v12, %v265_v13 }
  0x75   :  { %v273_v21 = vld [vmem:[#allocation10 + $0xa0] sm:$0xff]  ;;  %v274_v23 = vld [vmem:[#allocation10 + $0xa8] sm:$0xff]  ;;  %1103 = vmatprep.subr.bf16.mxu0 %v2094_v15  ;;  %1063 = vmatpush1.bf16.msra.mxu1 %v2091_v11  ;;  %v2101_v25 = vcombine.low %v262_v17, %v266_v18  ;;  %v2770_v7 = vshrl.u32 %v129_v6, 7 }
  0x76   :  { %1064 = vmatprep.subr.bf16.mxu1 %v2100_v16  ;;  %v2108_v26 = vcombine.high %v269_v19, %v273_v21  ;;  %v2110_v27 = vcombine.high %v270_v22, %v274_v23  ;;  %v277_v28 = vld [vmem:[#allocation10 + $0xc0] sm:$0xff]  ;;  %v278_v30 = vld [vmem:[#allocation10 + $0xc8] sm:$0xff]  ;;  %v2107_v32 = vcombine.low %v269_v19, %v273_v21  ;;  %v2109_v33 = vcombine.low %v270_v22, %v274_v23 }
  0x77   :  { %2090 = vmatmul.mubr.msk.bf16.vlgmr.msra.gmra.mrb[0].mxu0 %vm159_vm0, %v123_v5  ;;  %v281_v29 = vld [vmem:[#allocation10 + $0xe0] sm:$0xff]  ;;  %v282_v31 = vld [vmem:[#allocation10 + $0xe8] sm:$0xff]  ;;  %v2773_v8 = vsub.s32 0, %v2770_v7  ;;  %v2779_v10 = vsub.s32 1, %v2770_v7 }
  0x78   :  { %1104 = vmatpush1.bf16.msra.mxu0 %v2093_v14  ;;  %v2116_v34 = vcombine.high %v277_v28, %v281_v29  ;;  %v2118_v35 = vcombine.high %v278_v30, %v282_v31  ;;  %v285_v36 = vld [vmem:[#allocation10 + $0x100] sm:$0xff]  ;;  %v286_v38 = vld [vmem:[#allocation10 + $0x108] sm:$0xff]  ;;  %v2115_v40 = vcombine.low %v277_v28, %v281_v29  ;;  %v2117_v41 = vcombine.low %v278_v30, %v282_v31 }
  0x79   :  { %1105 = vmatprep.subr.bf16.mxu0 %v2102_v20  ;;  %1065 = vmatpush1.bf16.msra.mxu1 %v2099_v24  ;;  %v289_v37 = vld [vmem:[#allocation10 + $0x120] sm:$0xff]  ;;  %v290_v39 = vld [vmem:[#allocation10 + $0x128] sm:$0xff] }
  0x7a   :  { %1066 = vmatprep.subr.bf16.mxu1 %v2108_v26  ;;  %v2124_v42 = vcombine.high %v285_v36, %v289_v37  ;;  %v2126_v43 = vcombine.high %v286_v38, %v290_v39  ;;  %v293_v44 = vld [vmem:[#allocation10 + $0x140] sm:$0xff]  ;;  %v294_v46 = vld [vmem:[#allocation10 + $0x148] sm:$0xff]  ;;  %v2123_v48 = vcombine.low %v285_v36, %v289_v37  ;;  %v2125_v49 = vcombine.low %v286_v38, %v290_v39 }
  0x7b   :  { %v297_v45 = vld [vmem:[#allocation10 + $0x160] sm:$0xff]  ;;  %v298_v47 = vld [vmem:[#allocation10 + $0x168] sm:$0xff] }
  0x7c   :  { %1106 = vmatpush1.bf16.msra.mxu0 %v2101_v25  ;;  %v2132_v50 = vcombine.high %v293_v44, %v297_v45  ;;  %v2134_v51 = vcombine.high %v294_v46, %v298_v47  ;;  %v301_v52 = vld [vmem:[#allocation10 + $0x180] sm:$0xff]  ;;  %v302_v54 = vld [vmem:[#allocation10 + $0x188] sm:$0xff]  ;;  %v2131_v56 = vcombine.low %v293_v44, %v297_v45  ;;  %v2133_v57 = vcombine.low %v294_v46, %v298_v47 }
  0x7d   :  { %1107 = vmatprep.subr.bf16.mxu0 %v2110_v27  ;;  %1067 = vmatpush1.bf16.msra.mxu1 %v2107_v32  ;;  %v305_v53 = vld [vmem:[#allocation10 + $0x1a0] sm:$0xff]  ;;  %v306_v55 = vld [vmem:[#allocation10 + $0x1a8] sm:$0xff] }
  0x7e   :  { %1068 = vmatprep.subr.bf16.mxu1 %v2116_v34  ;;  %v2140_v58 = vcombine.high %v301_v52, %v305_v53  ;;  %v2142_v59 = vcombine.high %v302_v54, %v306_v55  ;;  %v309_v60 = vld [vmem:[#allocation10 + $0x1c0] sm:$0xff]  ;;  %v310_v62 = vld [vmem:[#allocation10 + $0x1c8] sm:$0xff]  ;;  %v2139_v0 = vcombine.low %v301_v52, %v305_v53  ;;  %v2141_v1 = vcombine.low %v302_v54, %v306_v55 }
  0x7f   :  { %v313_v61 = vld [vmem:[#allocation10 + $0x1e0] sm:$0xff]  ;;  %v314_v63 = vld [vmem:[#allocation10 + $0x1e8] sm:$0xff] }
  0x80   :  { %1108 = vmatpush1.bf16.msra.mxu0 %v2109_v33  ;;  %v2148_v2 = vcombine.high %v309_v60, %v313_v61  ;;  %v2150_v3 = vcombine.high %v310_v62, %v314_v63  ;;  %v2147_v4 = vcombine.low %v309_v60, %v313_v61  ;;  %v2149_v5 = vcombine.low %v310_v62, %v314_v63  ;;  %v116_v9 = vld [vmem:[%s2963_s2] sm:$0x3]  ;;  %v318_v25 = vld [vmem:[#allocation10 + $0x208] sm:$0xff] }
  0x81   :  { %1109 = vmatprep.subr.bf16.mxu0 %v2118_v35  ;;  %1069 = vmatpush1.bf16.msra.mxu1 %v2115_v40  ;;  %v132_v11 = vrot.slane %v116_v9, %v2773_v8  ;;  %v136_v12 = vrot.slane %v116_v9, %v2779_v10  ;;  %v317_v23 = vld [vmem:[#allocation10 + $0x200] sm:$0xff]  ;;  %v322_v27 = vld [vmem:[#allocation10 + $0x228] sm:$0xff] }
  0x82   :  { %1070 = vmatprep.subr.bf16.mxu1 %v2124_v42  ;;  %v321_v24 = vld [vmem:[#allocation10 + $0x220] sm:$0xff]  ;;  %v2157_v28 = vcombine.low %v318_v25, %v322_v27  ;;  %v2158_v29 = vcombine.high %v318_v25, %v322_v27  ;;  %v326_v33 = vld [vmem:[#allocation10 + $0x248] sm:$0xff] }
  0x83   :  { %v2156_v26 = vcombine.high %v317_v23, %v321_v24  ;;  %v2155_v30 = vcombine.low %v317_v23, %v321_v24  ;;  %v325_v31 = vld [vmem:[#allocation10 + $0x240] sm:$0xff]  ;;  %v330_v35 = vld [vmem:[#allocation10 + $0x268] sm:$0xff] }
  0x84   :  { %1110 = vmatpush1.bf16.msra.mxu0 %v2117_v41  ;;  %v329_v32 = vld [vmem:[#allocation10 + $0x260] sm:$0xff]  ;;  %v2165_v36 = vcombine.low %v326_v33, %v330_v35  ;;  %v2166_v37 = vcombine.high %v326_v33, %v330_v35  ;;  %v334_v41 = vld [vmem:[#allocation10 + $0x288] sm:$0xff] }
  0x85   :  { %1111 = vmatprep.subr.bf16.mxu0 %v2126_v43  ;;  %1071 = vmatpush1.bf16.msra.mxu1 %v2123_v48  ;;  %v2164_v34 = vcombine.high %v325_v31, %v329_v32  ;;  %v2163_v38 = vcombine.low %v325_v31, %v329_v32  ;;  %v333_v39 = vld [vmem:[#allocation10 + $0x280] sm:$0xff]  ;;  %v338_v43 = vld [vmem:[#allocation10 + $0x2a8] sm:$0xff]  ;;  %v260_v32 = vld [vmem:[#allocation10 + $0x38] sm:$0xff] }
  0x86   :  { %1072 = vmatprep.subr.bf16.mxu1 %v2132_v50  ;;  %v337_v40 = vld [vmem:[#allocation10 + $0x2a0] sm:$0xff]  ;;  %v2173_v44 = vcombine.low %v334_v41, %v338_v43  ;;  %v2174_v45 = vcombine.high %v334_v41, %v338_v43  ;;  %v366_v9 = vld [vmem:[#allocation10 + $0x388] sm:$0xff] }
  0x87   :  { %v2172_v42 = vcombine.high %v333_v39, %v337_v40  ;;  %v2171_v46 = vcombine.low %v333_v39, %v337_v40  ;;  %v341_v47 = vld [vmem:[#allocation10 + $0x2c0] sm:$0xff] }
  0x88   :  { %1112 = vmatpush1.bf16.msra.mxu0 %v2125_v49  ;;  %v345_v48 = vld [vmem:[#allocation10 + $0x2e0] sm:$0xff]  ;;  %v342_v49 = vld [vmem:[#allocation10 + $0x2c8] sm:$0xff] }
  0x89   :  { %1113 = vmatprep.subr.bf16.mxu0 %v2134_v51  ;;  %1073 = vmatpush1.bf16.msra.mxu1 %v2131_v56  ;;  %v2180_v50 = vcombine.high %v341_v47, %v345_v48  ;;  %v346_v51 = vld [vmem:[#allocation10 + $0x2e8] sm:$0xff]  ;;  %v2179_v54 = vcombine.low %v341_v47, %v345_v48  ;;  %v349_v55 = vld [vmem:[#allocation10 + $0x300] sm:$0xff] }
  0x8a   :  { %1074 = vmatprep.subr.bf16.mxu1 %v2140_v58  ;;  %v2181_v52 = vcombine.low %v342_v49, %v346_v51  ;;  %v2182_v53 = vcombine.high %v342_v49, %v346_v51  ;;  %v353_v56 = vld [vmem:[#allocation10 + $0x320] sm:$0xff] }
  0x8b   :  { %v2188_v58 = vcombine.high %v349_v55, %v353_v56  ;;  %v357_v60 = vld [vmem:[#allocation10 + $0x340] sm:$0xff]  ;;  %v2187_v63 = vcombine.low %v349_v55, %v353_v56 }
  0x8c   :  { %1114 = vmatpush1.bf16.msra.mxu0 %v2133_v57  ;;  %v350_v57 = vld [vmem:[#allocation10 + $0x308] sm:$0xff]  ;;  %v361_v61 = vld [vmem:[#allocation10 + $0x360] sm:$0xff] }
  0x8d   :  { %1115 = vmatprep.subr.bf16.mxu0 %v2142_v59  ;;  %1075 = vmatpush1.bf16.msra.mxu1 %v2139_v0  ;;  %v354_v59 = vld [vmem:[#allocation10 + $0x328] sm:$0xff]  ;;  %v369_v6 = vld [vmem:[#allocation10 + $0x3a0] sm:$0xff] }
  0x8e   :  { %1076 = vmatprep.subr.bf16.mxu1 %v2148_v2  ;;  %v2190_v62 = vcombine.high %v350_v57, %v354_v59  ;;  %v358_v0 = vld [vmem:[#allocation10 + $0x348] sm:$0xff]  ;;  %v2189_v2 = vcombine.low %v350_v57, %v354_v59 }
  0x90   :  { %1116 = vmatpush1.bf16.msra.mxu0 %v2141_v1  ;;  %v362_v1 = vld [vmem:[#allocation10 + $0x368] sm:$0xff] }
  0x91   :  { %1117 = vmatprep.subr.bf16.mxu0 %v2150_v3  ;;  %1077 = vmatpush1.bf16.msra.mxu1 %v2147_v4  ;;  %v2196_v3 = vcombine.high %v357_v60, %v361_v61  ;;  %v2198_v4 = vcombine.high %v358_v0, %v362_v1 }
  0x92   :  { %1078 = vmatprep.subr.bf16.mxu1 %v2156_v26 }
  0x94   :  { %1118 = vmatpush1.bf16.msra.mxu0 %v2149_v5  ;;  %v365_v5 = vld [vmem:[#allocation10 + $0x380] sm:$0xff] }
  0x95   :  { %1119 = vmatprep.subr.bf16.mxu0 %v2158_v29  ;;  %1079 = vmatpush1.bf16.msra.mxu1 %v2155_v30  ;;  %v259_v29 = vld [vmem:[#allocation10 + $0x30] sm:$0xff]  ;;  %v256_v30 = vld [vmem:[#allocation10 + $0x18] sm:$0xff] }
  0x96   :  { %1080 = vmatprep.subr.bf16.mxu1 %v2164_v34  ;;  %v2097_v34 = vcombine.low %v256_v30, %v260_v32  ;;  %v2098_v35 = vcombine.high %v256_v30, %v260_v32  ;;  %v295_v32 = vld [vmem:[#allocation10 + $0x150] sm:$0xff] }
  0x98   :  { %1120 = vmatpush1.bf16.msra.mxu0 %v2157_v28  ;;  %v255_v28 = vld [vmem:[#allocation10 + $0x10] sm:$0xff] }
  0x99   :  { %1121 = vmatprep.subr.bf16.mxu0 %v2166_v37  ;;  %1081 = vmatpush1.bf16.msra.mxu1 %v2163_v38  ;;  %v2096_v31 = vcombine.high %v255_v28, %v259_v29  ;;  %v2095_v33 = vcombine.low %v255_v28, %v259_v29 }
  0x9a   :  { %1082 = vmatprep.subr.bf16.mxu1 %v2172_v42 }
  0x9c   :  { %1122 = vmatpush1.bf16.msra.mxu0 %v2165_v36 }
  0x9d   :  { %1123 = vmatprep.subr.bf16.mxu0 %v2174_v45  ;;  %1083 = vmatpush1.bf16.msra.mxu1 %v2171_v46  ;;  %v118_v45 = vld [vmem:[#allocation8] sm:$0x3] }
  0x9e   :  { %1084 = vmatprep.subr.bf16.mxu1 %v2180_v50 }
  0xa0   :  { %1124 = vmatpush1.bf16.msra.mxu0 %v2173_v44  ;;  %v117_v44 = vld [vmem:[#allocation7] sm:$0x3] }
  0xa1   :  { %1125 = vmatprep.subr.bf16.mxu0 %v2182_v53  ;;  %1085 = vmatpush1.bf16.msra.mxu1 %v2179_v54  ;;  %v231_v48 = vrot.slane %v117_v44, %v2779_v10  ;;  %v227_v49 = vrot.slane %v117_v44, %v2773_v8  ;;  %v240_v54 = vrot.slane %v118_v45, %v2773_v8 }
  0xa2   :  { %1086 = vmatprep.subr.bf16.mxu1 %v2188_v58 }
  0xa4   :  { %1126 = vmatpush1.bf16.msra.mxu0 %v2181_v52  ;;  %v244_v52 = vrot.slane %v118_v45, %v2779_v10 }
  0xa5   :  { %1127 = vmatprep.subr.bf16.mxu0 %v2190_v62  ;;  %1087 = vmatpush1.bf16.msra.mxu1 %v2187_v63  ;;  %v268_v62 = vld [vmem:[#allocation10 + $0x78] sm:$0xff] }
  0xa6   :  { %1088 = vmatprep.subr.bf16.mxu1 %v2196_v3 }
  0xa8   :  { %1128 = vmatpush1.bf16.msra.mxu0 %v2189_v2 }
  0xa9   :  { %1129 = vmatprep.subr.bf16.mxu0 %v2198_v4  ;;  %v275_v4 = vld [vmem:[#allocation10 + $0xb0] sm:$0xff] }
 0x14a   :  { %v197_v13 = vpop.f32.mrb[0].mxu0 }
 0x14b   :  { %v2783_v14 = vadd.f32 %v197_v13, %v132_v11  ;;  %v199_v15 = vpop.f32.mrb[1].mxu0  ;;  %v370_v11 = vld [vmem:[#allocation10 + $0x3a8] sm:$0xff]  ;;  %v2197_v13 = vcombine.low %v358_v0, %v362_v1  ;;  %v271_v1 = vld [vmem:[#allocation10 + $0x90] sm:$0xff] }
 0x14c   :  { %v2785_v16 = vadd.f32 %v199_v15, %v136_v12  ;;  %v201_v17 = vpop.f32.mrb[2].mxu0  ;;  %v2195_v12 = vcombine.low %v357_v60, %v361_v61  ;;  %v2204_v15 = vcombine.high %v365_v5, %v369_v6  ;;  %v2205_v23 = vcombine.low %v366_v9, %v370_v11  ;;  %v267_v61 = vld [vmem:[#allocation10 + $0x70] sm:$0xff] }
 0x14d   :  { %v202_v18 = vpop.f32.mrb[3].mxu0  ;;  %v207_v20 = vmul.f32 %v2783_v14, %v2783_v14  ;;  %v2206_v17 = vcombine.high %v366_v9, %v370_v11  ;;  %1130 = vmatpush1.bf16.msra.mxu0 %v2197_v13 }
 0x14e   :  { %v204_v19 = vadd.f32 %v2785_v16, %v2783_v14  ;;  %v208_v21 = vmul.f32 %v2785_v16, %v2785_v16  ;;  %v373_v18 = vld [vmem:[#allocation10 + $0x3c0] sm:$0xff]  ;;  %1089 = vmatpush1.bf16.msra.mxu1 %v2195_v12  ;;  %v2112_v12 = vcombine.high %v271_v1, %v275_v4 }
 0x14f   :  { %1090 = vmatprep.subr.bf16.mxu1 %v2204_v15  ;;  %1131 = vmatprep.subr.bf16.mxu0 %v2206_v17  ;;  %v279_v15 = vld [vmem:[#allocation10 + $0xd0] sm:$0xff] }
 0x150   :  { %205 = vadd.xlane.f32.xlu0 %v204_v19  ;;  %v209_v22 = vadd.f32 %v208_v21, %v207_v20  ;;  %v377_v19 = vld [vmem:[#allocation10 + $0x3e0] sm:$0xff]  ;;  %v374_v20 = vld [vmem:[#allocation10 + $0x3c8] sm:$0xff]  ;;  %v283_v17 = vld [vmem:[#allocation10 + $0xf0] sm:$0xff] }
 0x151   :  { %v378_v21 = vld [vmem:[#allocation10 + $0x3e8] sm:$0xff]  ;;  %v2212_v24 = vcombine.high %v373_v18, %v377_v19  ;;  %v2211_v26 = vcombine.low %v373_v18, %v377_v19  ;;  %1132 = vmatpush1.bf16.msra.mxu0 %v2205_v23  ;;  %v280_v18 = vld [vmem:[#allocation10 + $0xd8] sm:$0xff]  ;;  %v2119_v28 = vcombine.low %v279_v15, %v283_v17 }
 0x152   :  { %v2214_v25 = vcombine.high %v374_v20, %v378_v21  ;;  %v2213_v27 = vcombine.low %v374_v20, %v378_v21  ;;  %v284_v19 = vld [vmem:[#allocation10 + $0xf8] sm:$0xff]  ;;  %v2111_v20 = vcombine.low %v271_v1, %v275_v4 }
 0x153   :  { %v2122_v23 = vcombine.high %v280_v18, %v284_v19  ;;  %v2121_v29 = vcombine.low %v280_v18, %v284_v19  ;;  %v328_v1 = vld [vmem:[#allocation10 + $0x258] sm:$0xff] }
 0x154   :  { %210 = vadd.xlane.f32.xlu0 %v209_v22  ;;  %v2203_v22 = vcombine.low %v365_v5, %v369_v6  ;;  %1133 = vmatprep.subr.bf16.mxu0 %v2214_v25  ;;  %v272_v5 = vld [vmem:[#allocation10 + $0x98] sm:$0xff]  ;;  %v291_v25 = vld [vmem:[#allocation10 + $0x130] sm:$0xff] }
 0x155   :  { %1134 = vmatpush1.bf16.msra.mxu0 %v2213_v27  ;;  %v276_v6 = vld [vmem:[#allocation10 + $0xb8] sm:$0xff] }
 0x156   :  { %1091 = vmatpush1.bf16.msra.mxu1 %v2203_v22  ;;  %1185 = vmatprep.subr.bf16.mxu0 %v2098_v35  ;;  %v2114_v13 = vcombine.high %v272_v5, %v276_v6  ;;  %v2113_v21 = vcombine.low %v272_v5, %v276_v6  ;;  %v2120_v22 = vcombine.high %v279_v15, %v283_v17  ;;  %v292_v27 = vld [vmem:[#allocation10 + $0x138] sm:$0xff] }
 0x157   :  { %1092 = vmatprep.subr.bf16.mxu1 %v2212_v24  ;;  %v287_v24 = vld [vmem:[#allocation10 + $0x110] sm:$0xff]  ;;  %v300_v35 = vld [vmem:[#allocation10 + $0x178] sm:$0xff] }
 0x158   :  { %v2128_v30 = vcombine.high %v287_v24, %v291_v25 }
 0x15a   :  { %1093 = vmatpush1.bf16.msra.mxu1 %v2211_v26  ;;  %v288_v26 = vld [vmem:[#allocation10 + $0x118] sm:$0xff] }
 0x15b   :  { %1144 = vmatprep.subr.bf16.mxu1 %v2096_v31  ;;  %v2130_v31 = vcombine.high %v288_v26, %v292_v27 }
 0x1dd   :  { %v206_v36 = vpop.xlane.xlu0 %205 }
 0x1de   :  { %v212_v37 = vmul.f32 0.00390625, %v206_v36  ;;  %v2127_v36 = vcombine.low %v287_v24, %v291_v25 }
 0x1e0   :  { %v214_v39 = vmul.f32 %v212_v37, %v212_v37  ;;  %v217_v46 = vsub.f32 %v2783_v14, %v212_v37  ;;  %v218_v47 = vsub.f32 %v2785_v16, %v212_v37  ;;  %v263_v14 = vld [vmem:[#allocation10 + $0x50] sm:$0xff]  ;;  %v264_v16 = vld [vmem:[#allocation10 + $0x58] sm:$0xff]  ;;  %v2129_v37 = vcombine.low %v288_v26, %v292_v27 }
 0x1e1   :  { %v211_v38 = vpop.xlane.xlu0 %210  ;;  %v2104_v2 = vcombine.high %v263_v14, %v267_v61  ;;  %v2106_v3 = vcombine.high %v264_v16, %v268_v62  ;;  %v2103_v9 = vcombine.low %v263_v14, %v267_v61  ;;  %v2105_v11 = vcombine.low %v264_v16, %v268_v62  ;;  %v327_v62 = vld [vmem:[#allocation10 + $0x250] sm:$0xff] }
 0x1e2   :  { %v213_v40 = vmul.f32 0.00390625, %v211_v38 }
 0x1e4   :  { %v215_v41 = vsub.f32 %v213_v40, %v214_v39  ;;  %v303_v40 = vld [vmem:[#allocation10 + $0x190] sm:$0xff] }
 0x1e6   :  { %v216_v42 = vmax.f32 %v215_v41, 0.0  ;;  %v307_v41 = vld [vmem:[#allocation10 + $0x1b0] sm:$0xff] }
 0x1e8   :  { %v219_v43 = vadd.f32 1e-05, %v216_v42  ;;  %v304_v42 = vld [vmem:[#allocation10 + $0x198] sm:$0xff] }
 0x1ea   :  { %2456 = vrsqrt.f32 %v219_v43  ;;  %v308_v43 = vld [vmem:[#allocation10 + $0x1b8] sm:$0xff] }
 0x1f4   :  { %v2457_v50 = vpop.eup %2456 }
 0x1f5   :  { %v222_v51 = vmul.f32 %v2457_v50, %v218_v47  ;;  %v221_v53 = vmul.f32 %v2457_v50, %v217_v46  ;;  %v2144_v46 = vcombine.high %v303_v40, %v307_v41  ;;  %v2146_v47 = vcombine.high %v304_v42, %v308_v43  ;;  %v312_v50 = vld [vmem:[#allocation10 + $0x1d8] sm:$0xff] }
 0x1f7   :  { %v235_v55 = vmul.f32 %v231_v48, %v222_v51  ;;  %v234_v56 = vmul.f32 %v227_v49, %v221_v53  ;;  %v311_v48 = vld [vmem:[#allocation10 + $0x1d0] sm:$0xff]  ;;  %v316_v51 = vld [vmem:[#allocation10 + $0x1f8] sm:$0xff]  ;;  %v2145_v53 = vcombine.low %v304_v42, %v308_v43 }
 0x1f8   :  { %v315_v49 = vld [vmem:[#allocation10 + $0x1f0] sm:$0xff]  ;;  %v2153_v14 = vcombine.low %v312_v50, %v316_v51 }
 0x1f9   :  { %v248_v57 = vadd.f32 %v244_v52, %v235_v55  ;;  %v247_v58 = vadd.f32 %v240_v54, %v234_v56  ;;  %v2143_v52 = vcombine.low %v303_v40, %v307_v41  ;;  %v2152_v54 = vcombine.high %v311_v48, %v315_v49  ;;  %v319_v56 = vld [vmem:[#allocation10 + $0x210] sm:$0xff] }
 0x1fa   :  { %v2154_v55 = vcombine.high %v312_v50, %v316_v51 }
 0x1fb   :  { %v250_v59 = vmax.f32 %v248_v57, 0.0  ;;  %v249_v60 = vmax.f32 %v247_v58, 0.0  ;;  %v323_v57 = vld [vmem:[#allocation10 + $0x230] sm:$0xff]  ;;  %v320_v58 = vld [vmem:[#allocation10 + $0x218] sm:$0xff] }
 0x1fc   :  { %v2160_v61 = vcombine.high %v319_v56, %v323_v57 }
 0x1fd   :  { %v252_v63 = vpack.c.bf16 %v250_v59, %v250_v59  ;;  %v2799_v0 = vpack.c.bf16 %v249_v60, %v249_v60  ;;  %v324_v59 = vld [vmem:[#allocation10 + $0x238] sm:$0xff]  ;;  %v2151_v60 = vcombine.low %v311_v48, %v315_v49 }
 0x1fe   :  { %v2162_v16 = vcombine.high %v320_v58, %v324_v59  ;;  %v2161_v4 = vcombine.low %v320_v58, %v324_v59 }
 0x1ff   :  { %1094 = vmatprep.mubr.bf16.mxu1 %v252_v63  ;;  %1135 = vmatprep.mubr.bf16.mxu0 %v252_v63 }
 0x200   :  { %1095 = vmatmul.mubr.bf16.vlgmr.msra.gmra.mrb[0].mxu1 %v2799_v0  ;;  %1136 = vmatmul.mubr.bf16.vlgmr.msra.gmra.mrb[4].mxu0 %v2799_v0 }
 0x201   :  { %1145 = vmatpush1.bf16.msra.mxu1 %v2095_v33  ;;  %1186 = vmatpush1.bf16.msra.mxu0 %v2097_v34  ;;  %v299_v33 = vld [vmem:[#allocation10 + $0x170] sm:$0xff]  ;;  %v296_v34 = vld [vmem:[#allocation10 + $0x158] sm:$0xff] }
 0x202   :  { %1176 = vmatprep.mubr.bf16.mxu1 %v252_v63  ;;  %1217 = vmatprep.mubr.bf16.mxu0 %v252_v63  ;;  %v2136_v38 = vcombine.high %v295_v32, %v299_v33  ;;  %v2138_v39 = vcombine.high %v296_v34, %v300_v35  ;;  %v2135_v44 = vcombine.low %v295_v32, %v299_v33  ;;  %v331_v63 = vld [vmem:[#allocation10 + $0x270] sm:$0xff] }
 0x203   :  { %1146 = vmatprep.subr.bf16.mxu1 %v2104_v2  ;;  %1187 = vmatprep.subr.bf16.mxu0 %v2106_v3  ;;  %v2137_v45 = vcombine.low %v296_v34, %v300_v35  ;;  %v332_v2 = vld [vmem:[#allocation10 + $0x278] sm:$0xff]  ;;  %v2159_v3 = vcombine.low %v319_v56, %v323_v57  ;;  %v2168_v5 = vcombine.high %v327_v62, %v331_v63 }
 0x204   :  { %v2170_v6 = vcombine.high %v328_v1, %v332_v2  ;;  %v2167_v15 = vcombine.low %v327_v62, %v331_v63  ;;  %v2169_v17 = vcombine.low %v328_v1, %v332_v2 }
 0x205   :  { %1147 = vmatpush1.bf16.msra.mxu1 %v2103_v9  ;;  %1188 = vmatpush1.bf16.msra.mxu0 %v2105_v11  ;;  %v335_v9 = vld [vmem:[#allocation10 + $0x290] sm:$0xff] }
 0x206   :  { %1148 = vmatprep.subr.bf16.mxu1 %v2112_v12  ;;  %1189 = vmatprep.subr.bf16.mxu0 %v2114_v13  ;;  %v339_v11 = vld [vmem:[#allocation10 + $0x2b0] sm:$0xff]  ;;  %v336_v12 = vld [vmem:[#allocation10 + $0x298] sm:$0xff] }
 0x207   :  { %v340_v13 = vld [vmem:[#allocation10 + $0x2b8] sm:$0xff]  ;;  %v2176_v18 = vcombine.high %v335_v9, %v339_v11  ;;  %v2175_v24 = vcombine.low %v335_v9, %v339_v11  ;;  %v2811_v11 = vsub.s32 2, %v2770_v7 }
 0x208   :  { %v2178_v19 = vcombine.high %v336_v12, %v340_v13  ;;  %v2177_v25 = vcombine.low %v336_v12, %v340_v13 }
 0x209   :  { %1149 = vmatpush1.bf16.msra.mxu1 %v2111_v20  ;;  %1190 = vmatpush1.bf16.msra.mxu0 %v2113_v21  ;;  %v343_v20 = vld [vmem:[#allocation10 + $0x2d0] sm:$0xff] }
 0x20a   :  { %1150 = vmatprep.subr.bf16.mxu1 %v2120_v22  ;;  %1191 = vmatprep.subr.bf16.mxu0 %v2122_v23  ;;  %v347_v21 = vld [vmem:[#allocation10 + $0x2f0] sm:$0xff]  ;;  %v344_v22 = vld [vmem:[#allocation10 + $0x2d8] sm:$0xff] }
 0x20b   :  { %v348_v23 = vld [vmem:[#allocation10 + $0x2f8] sm:$0xff]  ;;  %v2184_v26 = vcombine.high %v343_v20, %v347_v21  ;;  %v2183_v32 = vcombine.low %v343_v20, %v347_v21 }
 0x20c   :  { %v2186_v27 = vcombine.high %v344_v22, %v348_v23  ;;  %v2185_v33 = vcombine.low %v344_v22, %v348_v23  ;;  %v2831_v22 = vsub.s32 4, %v2770_v7  ;;  %v2834_v23 = vsub.s32 5, %v2770_v7 }
 0x20d   :  { %1151 = vmatpush1.bf16.msra.mxu1 %v2119_v28  ;;  %1192 = vmatpush1.bf16.msra.mxu0 %v2121_v29  ;;  %v351_v28 = vld [vmem:[#allocation10 + $0x310] sm:$0xff] }
 0x20e   :  { %1152 = vmatprep.subr.bf16.mxu1 %v2128_v30  ;;  %1193 = vmatprep.subr.bf16.mxu0 %v2130_v31  ;;  %v355_v29 = vld [vmem:[#allocation10 + $0x330] sm:$0xff]  ;;  %v352_v30 = vld [vmem:[#allocation10 + $0x318] sm:$0xff] }
 0x20f   :  { %v356_v31 = vld [vmem:[#allocation10 + $0x338] sm:$0xff]  ;;  %v2192_v34 = vcombine.high %v351_v28, %v355_v29  ;;  %v2191_v40 = vcombine.low %v351_v28, %v355_v29 }
 0x210   :  { %v2194_v35 = vcombine.high %v352_v30, %v356_v31  ;;  %v2193_v41 = vcombine.low %v352_v30, %v356_v31  ;;  %v2847_v31 = vsub.s32 7, %v2770_v7 }
 0x211   :  { %1153 = vmatpush1.bf16.msra.mxu1 %v2127_v36  ;;  %1194 = vmatpush1.bf16.msra.mxu0 %v2129_v37  ;;  %v359_v36 = vld [vmem:[#allocation10 + $0x350] sm:$0xff] }
 0x212   :  { %1154 = vmatprep.subr.bf16.mxu1 %v2136_v38  ;;  %1195 = vmatprep.subr.bf16.mxu0 %v2138_v39  ;;  %v363_v37 = vld [vmem:[#allocation10 + $0x370] sm:$0xff]  ;;  %v360_v38 = vld [vmem:[#allocation10 + $0x358] sm:$0xff] }
 0x213   :  { %v364_v39 = vld [vmem:[#allocation10 + $0x378] sm:$0xff]  ;;  %v2200_v42 = vcombine.high %v359_v36, %v363_v37  ;;  %v2199_v48 = vcombine.low %v359_v36, %v363_v37 }
 0x214   :  { %v2202_v43 = vcombine.high %v360_v38, %v364_v39  ;;  %v2201_v49 = vcombine.low %v360_v38, %v364_v39 }
 0x215   :  { %1155 = vmatpush1.bf16.msra.mxu1 %v2135_v44  ;;  %1196 = vmatpush1.bf16.msra.mxu0 %v2137_v45  ;;  %v367_v44 = vld [vmem:[#allocation10 + $0x390] sm:$0xff] }
 0x216   :  { %1156 = vmatprep.subr.bf16.mxu1 %v2144_v46  ;;  %1197 = vmatprep.subr.bf16.mxu0 %v2146_v47  ;;  %v371_v45 = vld [vmem:[#allocation10 + $0x3b0] sm:$0xff]  ;;  %v368_v46 = vld [vmem:[#allocation10 + $0x398] sm:$0xff] }
 0x217   :  { %v372_v47 = vld [vmem:[#allocation10 + $0x3b8] sm:$0xff]  ;;  %v2208_v50 = vcombine.high %v367_v44, %v371_v45  ;;  %v2207_v56 = vcombine.low %v367_v44, %v371_v45 }
 0x218   :  { %v2210_v51 = vcombine.high %v368_v46, %v372_v47  ;;  %v2209_v57 = vcombine.low %v368_v46, %v372_v47 }
 0x219   :  { %1157 = vmatpush1.bf16.msra.mxu1 %v2143_v52  ;;  %1198 = vmatpush1.bf16.msra.mxu0 %v2145_v53  ;;  %v375_v52 = vld [vmem:[#allocation10 + $0x3d0] sm:$0xff] }
 0x21a   :  { %1158 = vmatprep.subr.bf16.mxu1 %v2152_v54  ;;  %1199 = vmatprep.subr.bf16.mxu0 %v2154_v55  ;;  %v379_v53 = vld [vmem:[#allocation10 + $0x3f0] sm:$0xff]  ;;  %v376_v54 = vld [vmem:[#allocation10 + $0x3d8] sm:$0xff] }
 0x21b   :  { %v380_v55 = vld [vmem:[#allocation10 + $0x3f8] sm:$0xff]  ;;  %v2216_v58 = vcombine.high %v375_v52, %v379_v53 }
 0x21c   :  { %v2218_v59 = vcombine.high %v376_v54, %v380_v55 }
 0x21d   :  { %1159 = vmatpush1.bf16.msra.mxu1 %v2151_v60  ;;  %1200 = vmatpush1.bf16.msra.mxu0 %v2153_v14  ;;  %v2215_v60 = vcombine.low %v375_v52, %v379_v53  ;;  %v2217_v14 = vcombine.low %v376_v54, %v380_v55 }
 0x21e   :  { %1160 = vmatprep.subr.bf16.mxu1 %v2160_v61  ;;  %1201 = vmatprep.subr.bf16.mxu0 %v2162_v16 }
 0x221   :  { %1161 = vmatpush1.bf16.msra.mxu1 %v2159_v3  ;;  %1202 = vmatpush1.bf16.msra.mxu0 %v2161_v4 }
 0x222   :  { %1162 = vmatprep.subr.bf16.mxu1 %v2168_v5  ;;  %1203 = vmatprep.subr.bf16.mxu0 %v2170_v6  ;;  %v119_v5 = vld [vmem:[%s2967_s6] sm:$0xff] }
 0x223   :  { %v385_v6 = vrot.slane %v119_v5, %v2773_v8  ;;  %v389_v9 = vrot.slane %v119_v5, %v2779_v10  ;;  %v393_v13 = vrot.slane %v119_v5, %v2811_v11  ;;  %v401_v29 = vrot.slane %v119_v5, %v2831_v22 }
 0x224   :  { %v405_v30 = vrot.slane %v119_v5, %v2834_v23 }
 0x225   :  { %1163 = vmatpush1.bf16.msra.mxu1 %v2167_v15  ;;  %1204 = vmatpush1.bf16.msra.mxu0 %v2169_v17  ;;  %v2819_v15 = vsub.s32 3, %v2770_v7 }
 0x226   :  { %1164 = vmatprep.subr.bf16.mxu1 %v2176_v18  ;;  %1205 = vmatprep.subr.bf16.mxu0 %v2178_v19 }
 0x227   :  { %v397_v21 = vrot.slane %v119_v5, %v2819_v15 }
 0x229   :  { %1165 = vmatpush1.bf16.msra.mxu1 %v2175_v24  ;;  %1206 = vmatpush1.bf16.msra.mxu0 %v2177_v25  ;;  %v2837_v25 = vsub.s32 6, %v2770_v7 }
 0x22a   :  { %1166 = vmatprep.subr.bf16.mxu1 %v2184_v26  ;;  %1207 = vmatprep.subr.bf16.mxu0 %v2186_v27 }
 0x22d   :  { %1167 = vmatpush1.bf16.msra.mxu1 %v2183_v32  ;;  %1208 = vmatpush1.bf16.msra.mxu0 %v2185_v33  ;;  %v409_v33 = vrot.slane %v119_v5, %v2837_v25 }
 0x22e   :  { %1168 = vmatprep.subr.bf16.mxu1 %v2192_v34  ;;  %1209 = vmatprep.subr.bf16.mxu0 %v2194_v35 }
 0x231   :  { %1169 = vmatpush1.bf16.msra.mxu1 %v2191_v40  ;;  %1210 = vmatpush1.bf16.msra.mxu0 %v2193_v41 }
 0x232   :  { %1170 = vmatprep.subr.bf16.mxu1 %v2200_v42  ;;  %1211 = vmatprep.subr.bf16.mxu0 %v2202_v43  ;;  %v413_v42 = vrot.slane %v119_v5, %v2847_v31  ;;  %v2401_v5 = vld [vmem:[#allocation11 + $0xd0] sm:$0xff]  }
 0x235   :  { %1171 = vmatpush1.bf16.msra.mxu1 %v2199_v48  ;;  %1212 = vmatpush1.bf16.msra.mxu0 %v2201_v49 }
 0x236   :  { %1172 = vmatprep.subr.bf16.mxu1 %v2208_v50  ;;  %1213 = vmatprep.subr.bf16.mxu0 %v2210_v51 }
 0x239   :  { %1173 = vmatpush1.bf16.msra.mxu1 %v2207_v56  ;;  %1214 = vmatpush1.bf16.msra.mxu0 %v2209_v57 }
 0x23a   :  { %1174 = vmatprep.subr.bf16.mxu1 %v2216_v58  ;;  %1215 = vmatprep.subr.bf16.mxu0 %v2218_v59 }
 0x23d   :  { %1175 = vmatpush1.bf16.msra.mxu1 %v2215_v60  ;;  %1216 = vmatpush1.bf16.msra.mxu0 %v2217_v14  ;;  %v2392_v14 = vld [vmem:[#allocation11 + $0x40] sm:$0xff]  }
 0x23e   :  { %2284 = vmatprep.subr.bf16.mxu1 %v2392_v14 }
 0x240   :  { %1177 = vmatmul.mubr.bf16.vlgmr.msra.gmra.mrb[4].mxu1 %v2799_v0  ;;  %1218 = vmatmul.mubr.bf16.vlgmr.msra.gmra.mrb[8].mxu0 %v2799_v0 }
 0x2d3   :  { %v1096_v61 = vpop.f32.mrb[0].mxu1  ;;  %v1137_v16 = vpop.f32.mrb[4].mxu0 }
 0x2d4   :  { %v1098_v62 = vpop.f32.mrb[1].mxu1  ;;  %v1139_v63 = vpop.f32.mrb[5].mxu0  ;;  %v2813_v0 = vadd.f32 %v1096_v61, %v385_v6  ;;  %v2825_v19 = vadd.f32 %v1137_v16, %v393_v13  ;;  %v2393_v61 = vld [vmem:[#allocation11 + $0xc0] sm:$0xff]   ;;  %v2402_v6 = vld [vmem:[#allocation11 + $0x10] sm:$0xff]   ;;  %v2404_v13 = vld [vmem:[#allocation11 + $0x58] sm:$0xff]  }
 0x2d5   :  { %v1100_v1 = vpop.f32.mrb[2].mxu1  ;;  %v1141_v2 = vpop.f32.mrb[6].mxu0  ;;  %v2815_v12 = vadd.f32 %v1098_v62, %v389_v9  ;;  %v2841_v27 = vadd.f32 %v1139_v63, %v397_v21  ;;  %v2394_v16 = vld [vmem:[#allocation11] sm:$0xff]   ;;  %2306 = vmatprep.subr.bf16.mxu0 %v2393_v61  ;;  %v2396_v63 = vld [vmem:[#allocation11 + $0x48] sm:$0xff]   ;;  %v2403_v9 = vld [vmem:[#allocation11 + $0x90] sm:$0xff]  }
 0x2d6   :  { %v1101_v3 = vpop.f32.mrb[3].mxu1  ;;  %v1142_v4 = vpop.f32.mrb[7].mxu0  ;;  %v1235_v17 = vmul.f32 %v2813_v0, %v2813_v0  ;;  %v1237_v26 = vmul.f32 %v2825_v19, %v2825_v19  ;;  %v2395_v62 = vld [vmem:[#allocation11 + $0x80] sm:$0xff]   ;;  %2285 = vmatpush3.bf16.msra.mxu1 %v2394_v16  ;;  %v2397_v1 = vld [vmem:[#allocation11 + $0xc8] sm:$0xff]  }
 0x2d7   :  { %v1236_v18 = vmul.f32 %v2815_v12, %v2815_v12  ;;  %v1226_v20 = vadd.f32 %v2815_v12, %v2813_v0  ;;  %v1238_v37 = vmul.f32 %v2841_v27, %v2841_v27  ;;  %2307 = vmatpush3.bf16.msra.mxu0 %v2395_v62  ;;  %v2398_v2 = vld [vmem:[#allocation11 + $0x8] sm:$0xff]   ;;  %2286 = vmatprep.subr.bf16.mxu1 %v2396_v63  ;;  %v2400_v4 = vld [vmem:[#allocation11 + $0x50] sm:$0xff]   ;;  %v2408_v21 = vld [vmem:[#allocation11 + $0x60] sm:$0xff]  }
 0x2d8   :  { %v2399_v3 = vld [vmem:[#allocation11 + $0x88] sm:$0xff]   ;;  %2308 = vmatprep.subr.bf16.mxu0 %v2397_v1 }
 0x2d9   :  { %v1243_v24 = vadd.f32 %v1236_v18, %v1235_v17  ;;  %v1227_v28 = vadd.f32 %v1226_v20, %v2825_v19  ;;  %v2405_v17 = vld [vmem:[#allocation11 + $0xd8] sm:$0xff]  }
 0x2da   :  { %2287 = vmatpush3.bf16.msra.mxu1 %v2398_v2  ;;  %v2406_v18 = vld [vmem:[#allocation11 + $0x18] sm:$0xff]  }
 0x2db   :  { %v1244_v32 = vadd.f32 %v1243_v24, %v1237_v26  ;;  %v1228_v36 = vadd.f32 %v1227_v28, %v2841_v27  ;;  %2309 = vmatpush3.bf16.msra.mxu0 %v2399_v3  ;;  %2288 = vmatprep.subr.bf16.mxu1 %v2400_v4  ;;  %v2407_v20 = vld [vmem:[#allocation11 + $0x98] sm:$0xff]   ;;  %v2409_v24 = vld [vmem:[#allocation11 + $0xe0] sm:$0xff]  }
 0x2dc   :  { %2310 = vmatprep.subr.bf16.mxu0 %v2401_v5  ;;  %v2410_v26 = vld [vmem:[#allocation11 + $0x20] sm:$0xff]  }
 0x2dd   :  { %v1245_v44 = vadd.f32 %v1244_v32, %v1238_v37  ;;  %v2411_v28 = vld [vmem:[#allocation11 + $0xa0] sm:$0xff]   ;;  %v2414_v32 = vld [vmem:[#allocation11 + $0x28] sm:$0xff]   ;;  %v2419_v37 = vld [vmem:[#allocation11 + $0xb0] sm:$0xff]  }
 0x2de   :  { %2289 = vmatpush3.bf16.msra.mxu1 %v2402_v6 }
 0x2df   :  { %2311 = vmatpush3.bf16.msra.mxu0 %v2403_v9  ;;  %2290 = vmatprep.subr.bf16.mxu1 %v2404_v13 }
 0x2e0   :  { %2312 = vmatprep.subr.bf16.mxu0 %v2405_v17 }
 0x2e2   :  { %2291 = vmatpush3.bf16.msra.mxu1 %v2406_v18 }
 0x2e3   :  { %2313 = vmatpush3.bf16.msra.mxu0 %v2407_v20  ;;  %2292 = vmatprep.subr.bf16.mxu1 %v2408_v21 }
 0x2e4   :  { %2314 = vmatprep.subr.bf16.mxu0 %v2409_v24 }
 0x2e6   :  { %2293 = vmatpush3.bf16.msra.mxu1 %v2410_v26 }
 0x2e7   :  { %2315 = vmatpush3.bf16.msra.mxu0 %v2411_v28 }
 0x313   :  { %v1178_v34 = vpop.f32.mrb[4].mxu1  ;;  %v1219_v35 = vpop.f32.mrb[8].mxu0 }
 0x314   :  { %v2853_v38 = vadd.f32 %v1178_v34, %v401_v29  ;;  %v1180_v39 = vpop.f32.mrb[5].mxu1  ;;  %v1221_v40 = vpop.f32.mrb[9].mxu0  ;;  %v2861_v47 = vadd.f32 %v1219_v35, %v409_v33  ;;  %v2412_v29 = vld [vmem:[#allocation11 + $0x68] sm:$0xff]   ;;  %v2416_v34 = vld [vmem:[#allocation11 + $0x70] sm:$0xff]  }
 0x315   :  { %v2855_v41 = vadd.f32 %v1180_v39, %v405_v30  ;;  %v1182_v7 = vpop.f32.mrb[6].mxu1  ;;  %v1223_v43 = vpop.f32.mrb[10].mxu0  ;;  %v2868_v54 = vadd.f32 %v1221_v40, %v413_v42  ;;  %v2413_v30 = vld [vmem:[#allocation11 + $0xe8] sm:$0xff]   ;;  %2294 = vmatprep.subr.bf16.mxu1 %v2412_v29  ;;  %v2417_v35 = vld [vmem:[#allocation11 + $0xf0] sm:$0xff]   ;;  %v2420_v39 = vld [vmem:[#allocation11 + $0x78] sm:$0xff]  }
 0x316   :  { %v1229_v45 = vadd.f32 %v1228_v36, %v2853_v38  ;;  %v1239_v46 = vmul.f32 %v2853_v38, %v2853_v38  ;;  %v1183_v48 = vpop.f32.mrb[7].mxu1  ;;  %v1224_v49 = vpop.f32.mrb[11].mxu0  ;;  %v1241_v53 = vmul.f32 %v2861_v47, %v2861_v47  ;;  %v2415_v33 = vld [vmem:[#allocation11 + $0xa8] sm:$0xff]   ;;  %2316 = vmatprep.subr.bf16.mxu0 %v2413_v30  ;;  %2295 = vmatpush3.bf16.msra.mxu1 %v2414_v32  ;;  %v2418_v36 = vld [vmem:[#allocation11 + $0x30] sm:$0xff]   ;;  %v2421_v40 = vld [vmem:[#allocation11 + $0xf8] sm:$0xff]  }
 0x317   :  { %v1240_v50 = vmul.f32 %v2855_v41, %v2855_v41  ;;  %v1242_v59 = vmul.f32 %v2868_v54, %v2868_v54  ;;  %2317 = vmatpush3.bf16.msra.mxu0 %v2415_v33  ;;  %2296 = vmatprep.subr.bf16.mxu1 %v2416_v34  ;;  %v2422_v42 = vld [vmem:[#allocation11 + $0x38] sm:$0xff]   ;;  %v2424_v43 = vld [vmem:[#allocation11 + $0x140] sm:$0xff]  }
 0x318   :  { %v1246_v51 = vadd.f32 %v1245_v44, %v1239_v46  ;;  %v1230_v52 = vadd.f32 %v1229_v45, %v2855_v41  ;;  %2318 = vmatprep.subr.bf16.mxu0 %v2417_v35  ;;  %v2423_v7 = vld [vmem:[#allocation11 + $0xb8] sm:$0xff]   ;;  %v2425_v44 = vld [vmem:[#allocation11 + $0x1c0] sm:$0xff]  }
 0x31a   :  { %v1231_v55 = vadd.f32 %v1230_v52, %v2861_v47  ;;  %v1247_v56 = vadd.f32 %v1246_v51, %v1240_v50  ;;  %2297 = vmatpush3.bf16.msra.mxu1 %v2418_v36 }
 0x31b   :  { %2319 = vmatpush3.bf16.msra.mxu0 %v2419_v37  ;;  %2298 = vmatprep.subr.bf16.mxu1 %v2420_v39 }
 0x31c   :  { %v1232_v57 = vadd.f32 %v1231_v55, %v2868_v54  ;;  %v1248_v58 = vadd.f32 %v1247_v56, %v1241_v53  ;;  %2320 = vmatprep.subr.bf16.mxu0 %v2421_v40  ;;  %v2881_v55 = vld [vmem:[%s2968_s7] sm:$0xff] }
 0x31d   :  { %v2886_v56 = vld [vmem:[%s2969_s8] sm:$0xff]  ;;  %v1299_v16 = vrot.slane %v2881_v55, %v2834_v23  ;;  %v1307_v62 = vrot.slane %v2881_v55, %v2847_v31 }
 0x31e   :  { %1233 = vadd.xlane.f32.xlu1 %v1232_v57  ;;  %v1249_v60 = vadd.f32 %v1248_v58, %v1242_v59  ;;  %2299 = vmatpush3.bf16.msra.mxu1 %v2422_v42  ;;  %v1287_v57 = vrot.slane %v2881_v55, %v2811_v11  ;;  %v1283_v58 = vrot.slane %v2881_v55, %v2779_v10 }
 0x31f   :  { %2321 = vmatpush3.bf16.msra.mxu0 %v2423_v7  ;;  %2328 = vmatprep.subr.bf16.mxu1 %v2424_v43  ;;  %v1291_v59 = vrot.slane %v2881_v55, %v2819_v15  ;;  %v1332_v14 = vrot.slane %v2886_v56, %v2779_v10  ;;  %v1340_v61 = vrot.slane %v2886_v56, %v2819_v15  ;;  %v2426_v7 = vld [vmem:[#allocation11 + $0x100] sm:$0xff]  }
 0x320   :  { %2350 = vmatprep.subr.bf16.mxu0 %v2425_v44  ;;  %v1328_v15 = vrot.slane %v2886_v56, %v2773_v8  ;;  %v1336_v4 = vrot.slane %v2886_v56, %v2811_v11  ;;  %v2427_v43 = vld [vmem:[#allocation11 + $0x180] sm:$0xff]   ;;  %v2428_v44 = vld [vmem:[#allocation11 + $0x148] sm:$0xff]  }
 0x322   :  { %1250 = vadd.xlane.f32.xlu1 %v1249_v60  ;;  %v1279_v60 = vrot.slane %v2881_v55, %v2773_v8  ;;  %v1348_v8 = vrot.slane %v2886_v56, %v2834_v23 }
 0x3ab   :  { %v1234_v45 = vpop.xlane.xlu1 %1233 }
 0x3ac   :  { %v2874_v46 = vmul.f32 0.0009765625, %v1234_v45  ;;  %v2429_v45 = vld [vmem:[#allocation11 + $0x1c8] sm:$0xff]  }
 0x3ae   :  { %v1254_v49 = vmul.f32 %v2874_v46, %v2874_v46  ;;  %v1258_v63 = vsub.f32 %v2815_v12, %v2874_v46  ;;  %v1260_v1 = vsub.f32 %v2841_v27, %v2874_v46  ;;  %v1257_v2 = vsub.f32 %v2813_v0, %v2874_v46 }
 0x3af   :  { %v1251_v48 = vpop.xlane.xlu1 %1250  ;;  %v1259_v10 = vsub.f32 %v2825_v19, %v2874_v46  ;;  %v1262_v12 = vsub.f32 %v2855_v41, %v2874_v46  ;;  %v1264_v27 = vsub.f32 %v2868_v54, %v2874_v46  ;;  %v1356_v41 = vrot.slane %v2886_v56, %v2847_v31 }
 0x3b0   :  { %v1253_v50 = vmul.f32 0.0009765625, %v1251_v48 }
 0x3b2   :  { %v1255_v51 = vsub.f32 %v1253_v50, %v1254_v49  ;;  %v2430_v50 = vld [vmem:[#allocation11 + $0x108] sm:$0xff]  }
 0x3b4   :  { %v1256_v52 = vmax.f32 %v1255_v51, 0.0  ;;  %v2431_v51 = vld [vmem:[#allocation11 + $0x188] sm:$0xff]  }
 0x3b6   :  { %v1265_v53 = vadd.f32 1e-05, %v1256_v52  ;;  %v2432_v52 = vld [vmem:[#allocation11 + $0x150] sm:$0xff]  }
 0x3b8   :  { %2458 = vrsqrt.f32 %v1265_v53  ;;  %v2433_v53 = vld [vmem:[#allocation11 + $0x1d0] sm:$0xff]  }
 0x3c2   :  { %v2912_v3 = vpop.eup %2458 }
 0x3c3   :  { %v1268_v5 = vmul.f32 %v2912_v3, %v1258_v63  ;;  %v1270_v0 = vmul.f32 %v2912_v3, %v1260_v1  ;;  %v1267_v19 = vmul.f32 %v2912_v3, %v1257_v2  ;;  %v1269_v6 = vmul.f32 %v2912_v3, %v1259_v10  ;;  %v2442_v10 = vld [vmem:[#allocation11 + $0x120] sm:$0xff]  }
 0x3c4   :  { %v1272_v9 = vmul.f32 %v2912_v3, %v1262_v12  ;;  %v1274_v11 = vmul.f32 %v2912_v3, %v1264_v27  ;;  %v1261_v63 = vsub.f32 %v2853_v38, %v2874_v46  ;;  %v1263_v1 = vsub.f32 %v2861_v47, %v2874_v46  ;;  %v2444_v12 = vld [vmem:[#allocation11 + $0x168] sm:$0xff]  }
 0x3c5   :  { %v1317_v13 = vmul.f32 %v1283_v58, %v1268_v5  ;;  %v1319_v54 = vmul.f32 %v1291_v59, %v1270_v0  ;;  %v1316_v17 = vmul.f32 %v1279_v60, %v1267_v19  ;;  %v1318_v18 = vmul.f32 %v1287_v57, %v1269_v6  ;;  %v2434_v57 = vld [vmem:[#allocation11 + $0x110] sm:$0xff]   ;;  %v2436_v59 = vld [vmem:[#allocation11 + $0x158] sm:$0xff]   ;;  %v2445_v27 = vld [vmem:[#allocation11 + $0x1e8] sm:$0xff]  }
 0x3c6   :  { %v1321_v20 = vmul.f32 %v1299_v16, %v1272_v9  ;;  %v1323_v21 = vmul.f32 %v1307_v62, %v1274_v11  ;;  %v2435_v58 = vld [vmem:[#allocation11 + $0x190] sm:$0xff]   ;;  %v2437_v60 = vld [vmem:[#allocation11 + $0x1d8] sm:$0xff]   ;;  %v2440_v16 = vld [vmem:[#allocation11 + $0x160] sm:$0xff]   ;;  %v1295_v2 = vrot.slane %v2881_v55, %v2831_v22  ;;  %v1271_v5 = vmul.f32 %v2912_v3, %v1261_v63 }
 0x3c7   :  { %v1366_v24 = vadd.f32 %v1332_v14, %v1317_v13  ;;  %v1368_v26 = vadd.f32 %v1340_v61, %v1319_v54  ;;  %v1365_v28 = vadd.f32 %v1328_v15, %v1316_v17  ;;  %v1367_v29 = vadd.f32 %v1336_v4, %v1318_v18  ;;  %v2438_v14 = vld [vmem:[#allocation11 + $0x118] sm:$0xff]   ;;  %v2441_v62 = vld [vmem:[#allocation11 + $0x1e0] sm:$0xff]   ;;  %v2446_v47 = vld [vmem:[#allocation11 + $0x128] sm:$0xff]  }
 0x3c8   :  { %v1370_v30 = vadd.f32 %v1348_v8, %v1321_v20  ;;  %v1372_v32 = vadd.f32 %v1356_v41, %v1323_v21  ;;  %v2439_v61 = vld [vmem:[#allocation11 + $0x198] sm:$0xff]   ;;  %v2443_v15 = vld [vmem:[#allocation11 + $0x1a0] sm:$0xff]   ;;  %v1303_v4 = vrot.slane %v2881_v55, %v2837_v25  ;;  %v1273_v38 = vmul.f32 %v2912_v3, %v1263_v1  ;;  %v2447_v46 = vld [vmem:[#allocation11 + $0x1a8] sm:$0xff]  }
 0x3c9   :  { %v1374_v33 = vmax.f32 %v1366_v24, 0.0  ;;  %v1376_v34 = vmax.f32 %v1368_v26, 0.0  ;;  %v1373_v23 = vmax.f32 %v1365_v28, 0.0  ;;  %v1375_v35 = vmax.f32 %v1367_v29, 0.0  ;;  %v2448_v19 = vld [vmem:[#allocation11 + $0x170] sm:$0xff]   ;;  %v2452_v41 = vld [vmem:[#allocation11 + $0x178] sm:$0xff]  }
 0x3ca   :  { %v1378_v36 = vmax.f32 %v1370_v30, 0.0  ;;  %v1380_v37 = vmax.f32 %v1372_v32, 0.0  ;;  %v1344_v0 = vrot.slane %v2886_v56, %v2831_v22  ;;  %v2449_v6 = vld [vmem:[#allocation11 + $0x1f0] sm:$0xff]   ;;  %v1320_v55 = vmul.f32 %v1295_v2, %v1271_v5  ;;  %v2453_v13 = vld [vmem:[#allocation11 + $0x1f8] sm:$0xff]   ;;  %v2219_v28 = vld [vmem:[%s2971_s10] ss:$0 sm:$0xff] }
 0x3cb   :  { %v1382_v39 = vpack.c.bf16 %v1374_v33, %v1374_v33  ;;  %v1384_v31 = vpack.c.bf16 %v1376_v34, %v1376_v34  ;;  %v1381_v40 = vpack.c.bf16 %v1373_v23, %v1373_v23  ;;  %v1383_v42 = vpack.c.bf16 %v1375_v35, %v1375_v35  ;;  %v2450_v11 = vld [vmem:[#allocation11 + $0x130] sm:$0xff]   ;;  %v2454_v22 = vld [vmem:[#allocation11 + $0x138] sm:$0xff]   ;;  %s2637_s10 = smov [#allocation13]  }
 0x3cc   :  { %v1386_v48 = vpack.c.bf16 %v1378_v36, %v1378_v36  ;;  %v1388_v49 = vpack.c.bf16 %v1380_v37, %v1380_v37  ;;  %v1322_v9 = vmul.f32 %v1303_v4, %v1273_v38  ;;  %v1352_v8 = vrot.slane %v2886_v56, %v2837_v25  ;;  %v2451_v3 = vld [vmem:[#allocation11 + $0x1b0] sm:$0xff]   ;;  %v2455_v18 = vld [vmem:[#allocation11 + $0x1b8] sm:$0xff]   ;;  %s2074_s13 = sshll.u32 %s2637_s10, 4  ;;  %s2075_s13 = int_to_ptr.vmem [resolvable:$true] %s2074_s13 }
 0x3cd   :  { %1939 = vmatprep.mubr.bf16.mxu1 %v1382_v39  ;;  %1979 = vmatprep.mubr.bf16.mxu0 %v1384_v31  ;;  %v1369_v54 = vadd.f32 %v1344_v0, %v1320_v55  ;;  %s2592_s3 = scalar_lea.vmem %s2075_s13, 128  ;;  %p2597_p7 = scmp.lt.s32.totalorder %s2075_s13, %s2075_s13 }
 0x3ce   :  { %1940 = vmatmul.mubr.bf16.vlgmr.msra.gmra.mrb[8].mxu1 %v1381_v40  ;;  %1980 = vmatmul.mubr.bf16.vlgmr.msra.gmra.mrb[12].mxu0 %v1383_v42  ;;  %v1371_v17 = vadd.f32 %v1352_v8, %v1322_v9  ;;  %p2593_p6 = scmp.ne.s32.totalorder %s2075_s13, %s2592_s3  ;;  %p2598_p8 = scmp.lt.s32.totalorder %s2592_s3, %s2592_s3 }
 0x3cf   :  { %2329 = vmatpush3.bf16.msra.mxu1 %v2426_v7  ;;  %2351 = vmatpush3.bf16.msra.mxu0 %v2427_v43  ;;  %v1377_v20 = vmax.f32 %v1369_v54, 0.0 }
 0x3d0   :  { %2019 = vmatprep.mubr.bf16.mxu1 %v1386_v48  ;;  %2059 = vmatprep.mubr.bf16.mxu0 %v1388_v49  ;;  %v1379_v21 = vmax.f32 %v1371_v17, 0.0  ;;  %p2599_p9 = por %p2598_p8, %p2597_p7 }
 0x3d1   :  { %2330 = vmatprep.subr.bf16.mxu1 %v2428_v44  ;;  %2352 = vmatprep.subr.bf16.mxu0 %v2429_v45  ;;  %v1385_v25 = vpack.c.bf16 %v1377_v20, %v1377_v20 }
 0x3d2   :  { %v1387_v56 = vpack.c.bf16 %v1379_v21, %v1379_v21  ;;  %p2600_p10 = pnand %p2599_p9, %p2593_p6 }
 0x3d3   :  { %2331 = vmatpush3.bf16.msra.mxu1 %v2430_v50  ;;  %2353 = vmatpush3.bf16.msra.mxu0 %v2431_v51 }
 0x3d4   :  { %2332 = vmatprep.subr.bf16.mxu1 %v2432_v52  ;;  %2354 = vmatprep.subr.bf16.mxu0 %v2433_v53 }
 0x3d7   :  { %2333 = vmatpush3.bf16.msra.mxu1 %v2434_v57  ;;  %2355 = vmatpush3.bf16.msra.mxu0 %v2435_v58 }
 0x3d8   :  { %2334 = vmatprep.subr.bf16.mxu1 %v2436_v59  ;;  %2356 = vmatprep.subr.bf16.mxu0 %v2437_v60 }
 0x3db   :  { %2335 = vmatpush3.bf16.msra.mxu1 %v2438_v14  ;;  %2357 = vmatpush3.bf16.msra.mxu0 %v2439_v61 }
 0x3dc   :  { %2336 = vmatprep.subr.bf16.mxu1 %v2440_v16  ;;  %2358 = vmatprep.subr.bf16.mxu0 %v2441_v62 }
 0x3df   :  { %2337 = vmatpush3.bf16.msra.mxu1 %v2442_v10  ;;  %2359 = vmatpush3.bf16.msra.mxu0 %v2443_v15 }
 0x3e0   :  { %2338 = vmatprep.subr.bf16.mxu1 %v2444_v12  ;;  %2360 = vmatprep.subr.bf16.mxu0 %v2445_v27 }
 0x3e3   :  { %2339 = vmatpush3.bf16.msra.mxu1 %v2446_v47  ;;  %2361 = vmatpush3.bf16.msra.mxu0 %v2447_v46 }
 0x3e4   :  { %2340 = vmatprep.subr.bf16.mxu1 %v2448_v19  ;;  %2362 = vmatprep.subr.bf16.mxu0 %v2449_v6 }
 0x3e7   :  { %2341 = vmatpush3.bf16.msra.mxu1 %v2450_v11  ;;  %2363 = vmatpush3.bf16.msra.mxu0 %v2451_v3 }
 0x3e8   :  { %2342 = vmatprep.subr.bf16.mxu1 %v2452_v41  ;;  %2364 = vmatprep.subr.bf16.mxu0 %v2453_v13 }
 0x3eb   :  { %2343 = vmatpush3.bf16.msra.mxu1 %v2454_v22  ;;  %2365 = vmatpush3.bf16.msra.mxu0 %v2455_v18 }
 0x3ee   :  { %2020 = vmatmul.mubr.bf16.vlgmr.msra.gmra.mrb[12].mxu1 %v1385_v25  ;;  %2060 = vmatmul.mubr.bf16.vlgmr.msra.gmra.mrb[16].mxu0 %v1387_v56 }
 0x4a1   :  { %v2300_v24 = vpop.f32.mrb[8].mxu1  ;;  %v2322_v26 = vpop.f32.mrb[12].mxu0 }
 0x4a2   :  { %v2301_v29 = vpop.f32.mrb[9].mxu1  ;;  %v2323_v30 = vpop.f32.mrb[13].mxu0 }
 0x4a3   :  { %v2302_v32 = vadd.f32 %v2301_v29, %v2300_v24  ;;  %v2324_v33 = vadd.f32 %v2323_v30, %v2322_v26  ;;  %v2303_v34 = vpop.f32.mrb[10].mxu1  ;;  %v2325_v23 = vpop.f32.mrb[14].mxu0 }
 0x4a4   :  { %v2304_v35 = vpop.f32.mrb[11].mxu1  ;;  %v2326_v36 = vpop.f32.mrb[15].mxu0 }
 0x4a5   :  { %v1942_v37 = vadd.f32 %v2302_v32, %v2219_v28 }
 0x4a7   :  { %v1982_v39 = vadd.f32 %v2324_v33, %v1942_v37 }
 0x4c1   :  { %v2344_v31 = vpop.f32.mrb[12].mxu1  ;;  %v2366_v40 = vpop.f32.mrb[16].mxu0 }
 0x4c2   :  { %v2345_v42 = vpop.f32.mrb[13].mxu1  ;;  %v2367_v7 = vpop.f32.mrb[17].mxu0 }
 0x4c3   :  { %v2346_v43 = vadd.f32 %v2345_v42, %v2344_v31  ;;  %v2368_v44 = vadd.f32 %v2367_v7, %v2366_v40  ;;  %v2347_v45 = vpop.f32.mrb[14].mxu1  ;;  %v2369_v48 = vpop.f32.mrb[18].mxu0 }
 0x4c4   :  { %v2348_v49 = vpop.f32.mrb[15].mxu1  ;;  %v2370_v50 = vpop.f32.mrb[19].mxu0 }
 0x4c5   :  { %v2022_v51 = vadd.f32 %v2346_v43, %v1982_v39 }
 0x4c7   :  { %v2062_v52 = vadd.f32 %v2368_v44, %v2022_v51 }
 0x4c9   :  { %2067 = vst [vmem:[#allocation13] sm:$0xff] %v2062_v52 }
 0x4ca   :  { %2603 = shalt.err (!%p2600_p10)
}
 0x4cb   :  { %s2604_s19 = scalar_lea.hbm %s2972_s11, 128 }
 0x4cc   :  { %p2605_p11 = scmp.ne.s32.totalorder %s2972_s11, %s2604_s19  ;;  %p2608_p12 = scmp.lt.u32.totalorder %s2604_s19, %s2972_s11 }
 0x4ce   :  { %p2610_p13 = pnand %p2608_p12, %p2605_p11 }
 0x4d0   :  { %2613 = shalt.err (!%p2610_p13)
}
 0x4d1   :  { %2077 = dma.vmem_to_hbm [thread:$0]  %s2075_s13, 128, %s2972_s11, [#allocation4]  }
 0x4d2   :  { %2622 = dma.done.wait [#allocation4], 128  }
 0x4d3   :  { %2623 = vsyncadd [#allocation4], 4294967168 }
 0x4d4   :  { %2081 = vsyncpa [#allocation3], 1 }
 0x4d5   :  { %2082 = vsyncpa [#allocation6], 1 }
 0x4d6   :  { %2083 = vsyncpa [#allocation9], 1 }
 0x4d7   :  { %2084 = vsyncpa [#allocation12], 1 }
 0x4d8   :  { %2085 = vsyncpa [#allocation4], 1 }

</bundles_post_ra>
